<compile_context>
chip_gen: v5e
topology: v5e:2x2
jax: 0.10.0
libtpu: 0.0.40
codegen_flags: <defaults>
</compile_context>

<pallas_src>
import math

import jax
import jax.numpy as jnp
from jax.experimental import pallas as pl
from jax.experimental.pallas import tpu as pltpu


# ----------------------------------------------------------------------------
# Kernel
# ----------------------------------------------------------------------------
def _bn_lrelu_slab(acc, scale, shift):
    """Eval-mode BN (conv bias folded into shift) + LeakyReLU(0.01), slab-wide."""
    y = acc * scale + shift
    return jnp.where(y >= 0.0, y, 0.01 * y)


def _up_block_kernel(x1_ref, x2_ref, kc_ref, bc_ref, uh_ref,
                     band1_ref, s1_ref, t1_ref,
                     band2_ref, s2_ref, t2_ref, o_ref):
    # x1_ref   : (1, H1, W1*C1)  bf16  low-res branch, lane-dense slab
    # x2_ref   : (1, H2, W2*C2)  bf16  skip connection, lane-dense slab
    # kc_ref   : (W1*C1, W2*C2)  bf16  kron(uw.T, w1x1): conv1x1 + width-upsample
    # bc_ref   : (1, W2*C2)      f32   conv1x1 bias folded through the upsample
    # uh_ref   : (H2, H1)        bf16  bilinear (align_corners=True) row operator
    # band1_ref: (3, 2*W2*C2, W2*Cout) bf16  stage-1 banded 3x3 weights [x2 ; x1u]
    # s1/t1    : (1, W2*Cout)    f32   BN1 scale/shift, W-tiled
    # band2_ref: (3, W2*Cout, W2*Cout) bf16  stage-2 banded 3x3 weights
    # s2/t2    : (1, W2*Cout)    f32
    # o_ref    : (1, H2, W2*Cout) f32  lane-dense output slab
    H2, WC2 = x2_ref.shape[1], x2_ref.shape[2]
    WCo = o_ref.shape[2]
    bf16 = jnp.bfloat16

    # --- conv1x1 folded with width-upsample (one MXU matmul), then row-upsample
    zw = jnp.dot(x1_ref[0], kc_ref[...],
                 preferred_element_type=jnp.float32)                    # (H1, W2*C2)
    x1u = jnp.dot(uh_ref[...], zw.astype(bf16),
                  preferred_element_type=jnp.float32) + bc_ref[...]     # (H2, W2*C2)

    # --- torch.cat([x2, up(x1)], dim=C): lane concat at a 128-aligned boundary
    xc = jnp.concatenate([x2_ref[0], x1u.astype(bf16)], axis=-1)        # (H2, 2*W2*C2)

    # --- Stage 1: conv3x3 as 3 banded slab matmuls (1-row zero halo in VMEM)
    z1 = jnp.zeros((1, 2 * WC2), bf16)
    xp = jnp.concatenate([z1, xc, z1], axis=0)                          # (H2+2, 2*W2*C2)
    acc = jnp.dot(xp[0:H2], band1_ref[0], preferred_element_type=jnp.float32)
    acc += jnp.dot(xp[1:H2 + 1], band1_ref[1], preferred_element_type=jnp.float32)
    acc += jnp.dot(xp[2:H2 + 2], band1_ref[2], preferred_element_type=jnp.float32)
    y1 = _bn_lrelu_slab(acc, s1_ref[...], t1_ref[...])                  # (H2, W2*Cout)
    # (Dropout is identity in eval mode.)

    # --- Stage 2: same banded form on the stage-1 slab
    z2 = jnp.zeros((1, WCo), bf16)
    yp = jnp.concatenate([z2, y1.astype(bf16), z2], axis=0)             # (H2+2, W2*Cout)
    acc = jnp.dot(yp[0:H2], band2_ref[0], preferred_element_type=jnp.float32)
    acc += jnp.dot(yp[1:H2 + 1], band2_ref[1], preferred_element_type=jnp.float32)
    acc += jnp.dot(yp[2:H2 + 2], band2_ref[2], preferred_element_type=jnp.float32)
    y2 = _bn_lrelu_slab(acc, s2_ref[...], t2_ref[...])                  # (H2, W2*Cout)

    o_ref[0] = y2.astype(o_ref.dtype)


# ----------------------------------------------------------------------------
# Wrapper-side parameter folding (tiny, runs once under jit)
# ----------------------------------------------------------------------------
def _bilinear_matrix(out_len, in_len):
    """1-D interpolation matrix (out_len, in_len), align_corners=True."""
    pos = jnp.arange(out_len, dtype=jnp.float32) * (in_len - 1) / max(out_len - 1, 1)
    i0 = jnp.floor(pos)
    f = pos - i0
    i1 = jnp.minimum(i0 + 1.0, float(in_len - 1))
    cols = jnp.arange(in_len, dtype=jnp.float32)[None, :]
    m0 = (cols == i0[:, None]).astype(jnp.float32)
    m1 = (cols == i1[:, None]).astype(jnp.float32)
    return m0 * (1.0 - f)[:, None] + m1 * f[:, None]


def _band_matrix(w_ky, W):
    """Banded (W*Cin, W*Cout) matrix for one ky tap of a 3x3 conv, pad=1.

    w_ky: (3, Cin, Cout) — the kx taps for a fixed ky.
    Encodes out[w_out, co] += sum_{kx, ci} in[w_out + kx - 1, ci] * w_ky[kx, ci, co]
    with zero padding at the width boundaries, acting on (H, W*Cin) slabs.
    """
    Kx, Cin, Cout = w_ky.shape
    win = jnp.arange(W)[:, None]
    wout = jnp.arange(W)[None, :]
    kx = win - wout + 1                                       # (W, W)
    valid = ((kx >= 0) & (kx < Kx)).astype(w_ky.dtype)
    taps = w_ky[jnp.clip(kx, 0, Kx - 1)] * valid[:, :, None, None]   # (W, W, Cin, Cout)
    return jnp.transpose(taps, (0, 2, 1, 3)).reshape(W * Cin, W * Cout)


def _bn_fold(conv_bias, gamma, beta, mean, var, eps=1e-5):
    """Fold conv bias into eval-mode BN:  y = conv(x)*scale + shift."""
    scale = gamma / jnp.sqrt(var + eps)
    shift = beta + (conv_bias - mean) * scale
    return scale, shift


def up_block_forward(x1_nchw, x2_nchw, params):
    """Matches UpBlock.forward (bilinear=True, inference mode)."""
    x1 = jnp.transpose(x1_nchw, (0, 2, 3, 1)).astype(jnp.float32)   # NHWC
    x2 = jnp.transpose(x2_nchw, (0, 2, 3, 1)).astype(jnp.float32)
    N, H1, W1, C1 = x1.shape
    _, H2, W2, C2 = x2.shape
    wc1 = params["wc1"]                                   # (3, 3, 2*C2, Cout)
    wc2 = params["wc2"]                                   # (3, 3, Cout, Cout)
    Cout = wc1.shape[-1]

    # Bilinear (align_corners=True) x2 upsampling 1-D operators.
    uh = _bilinear_matrix(H2, H1)                         # (H2, H1)
    uw = _bilinear_matrix(W2, W1)                         # (W2, W1)

    # conv1x1 folded with the width-upsample: one (W1*C1, W2*C2) matrix.
    k_comb = jnp.kron(uw.T, params["w1x1"])               # (W1*C1, W2*C2)
    b_comb = (uw.sum(axis=1, keepdims=True) *
              params["b1x1"][None, :]).reshape(1, W2 * C2)

    # Banded 3x3 conv weights, (3, W*Cin, W*Cout).
    # Stage-1 rows stacked [x2-channels ; upsampled-x1-channels] to match the
    # lane-concat order in the kernel (== torch.cat([x2, x1], dim=1)).
    band1 = jnp.stack([
        jnp.concatenate([_band_matrix(wc1[ky, :, :C2, :], W2),
                         _band_matrix(wc1[ky, :, C2:, :], W2)], axis=0)
        for ky in range(3)])                              # (3, 2*W2*C2, W2*Cout)
    band2 = jnp.stack([_band_matrix(wc2[ky], W2)
                       for ky in range(3)])               # (3, W2*Cout, W2*Cout)

    # Eval BN affines (conv bias folded), tiled over W for slab-wide epilogue.
    s1, t1 = _bn_fold(params["bc1"], params["bn1_gamma"], params["bn1_beta"],
                      params["bn1_mean"], params["bn1_var"])
    s2, t2 = _bn_fold(params["bc2"], params["bn2_gamma"], params["bn2_beta"],
                      params["bn2_mean"], params["bn2_var"])
    s1t = jnp.tile(s1, W2).reshape(1, W2 * Cout)
    t1t = jnp.tile(t1, W2).reshape(1, W2 * Cout)
    s2t = jnp.tile(s2, W2).reshape(1, W2 * Cout)
    t2t = jnp.tile(t2, W2).reshape(1, W2 * Cout)

    # bf16 matmul operands (MXU-native), fp32 accumulation in-kernel.
    bf16 = jnp.bfloat16
    x1_slab = x1.reshape(N, H1, W1 * C1).astype(bf16)     # lane-dense slab
    x2_slab = x2.reshape(N, H2, W2 * C2).astype(bf16)     # lane-dense slab

    out_slab = pl.pallas_call(
        _up_block_kernel,
        out_shape=jax.ShapeDtypeStruct((N, H2, W2 * Cout), jnp.float32),
        grid=(N,),
        in_specs=[
            pl.BlockSpec((1, H1, W1 * C1), lambda n: (n, 0, 0)),
            pl.BlockSpec((1, H2, W2 * C2), lambda n: (n, 0, 0)),
            pl.BlockSpec(k_comb.shape, lambda n: (0, 0)),
            pl.BlockSpec(b_comb.shape, lambda n: (0, 0)),
            pl.BlockSpec(uh.shape, lambda n: (0, 0)),
            pl.BlockSpec(band1.shape, lambda n: (0, 0, 0)),
            pl.BlockSpec((1, W2 * Cout), lambda n: (0, 0)),
            pl.BlockSpec((1, W2 * Cout), lambda n: (0, 0)),
            pl.BlockSpec(band2.shape, lambda n: (0, 0, 0)),
            pl.BlockSpec((1, W2 * Cout), lambda n: (0, 0)),
            pl.BlockSpec((1, W2 * Cout), lambda n: (0, 0)),
        ],
        out_specs=pl.BlockSpec((1, H2, W2 * Cout), lambda n: (n, 0, 0)),
        compiler_params=pltpu.CompilerParams(
            dimension_semantics=("parallel",),            # megacore sharding on v7x
            vmem_limit_bytes=32 * 1024 * 1024,
        ),
    )(x1_slab, x2_slab, k_comb.astype(bf16), b_comb, uh.astype(bf16),
      band1.astype(bf16), s1t, t1t, band2.astype(bf16), s2t, t2t)

    out = out_slab.reshape(N, H2, W2, Cout)
    return jnp.transpose(out, (0, 3, 1, 2))               # back to NCHW


# ----------------------------------------------------------------------------
# Deterministic parameter init (shapes follow UpBlock.__init__)
# ----------------------------------------------------------------------------
def init_params(key, in_ch1, in_ch2, out_ch):
    ks = jax.random.split(key, 14)

    def conv_init(kw, kb, cout, cin, k):
        bound = 1.0 / math.sqrt(cin * k * k)
        w = jax.random.uniform(kw, (cout, cin, k, k), jnp.float32, -bound, bound)
        b = jax.random.uniform(kb, (cout,), jnp.float32, -bound, bound)
        return w, b

    # conv1x1: in_ch1 -> in_ch2
    w1x1, b1x1 = conv_init(ks[0], ks[1], in_ch2, in_ch1, 1)
    # ConvBlock conv1: 2*in_ch2 -> out_ch, conv2: out_ch -> out_ch
    wc1, bc1 = conv_init(ks[2], ks[3], out_ch, 2 * in_ch2, 3)
    wc2, bc2 = conv_init(ks[4], ks[5], out_ch, out_ch, 3)

    def bn_init(kg, kb, km, kv, c):
        return (jax.random.uniform(kg, (c,), jnp.float32, 0.5, 1.5),
                jax.random.uniform(kb, (c,), jnp.float32, -0.5, 0.5),
                jax.random.uniform(km, (c,), jnp.float32, -0.1, 0.1),
                jax.random.uniform(kv, (c,), jnp.float32, 0.5, 1.5))

    g1, bt1, m1, v1 = bn_init(ks[6], ks[7], ks[8], ks[9], out_ch)
    g2, bt2, m2, v2 = bn_init(ks[10], ks[11], ks[12], ks[13], out_ch)

    # Reformat: 1x1 -> (Cin, Cout); 3x3 -> (Ky, Kx, Cin, Cout).
    return {
        "w1x1": jnp.transpose(w1x1[:, :, 0, 0], (1, 0)),
        "b1x1": b1x1,
        "wc1": jnp.transpose(wc1, (2, 3, 1, 0)),
        "bc1": bc1,
        "wc2": jnp.transpose(wc2, (2, 3, 1, 0)),
        "bc2": bc2,
        "bn1_gamma": g1, "bn1_beta": bt1, "bn1_mean": m1, "bn1_var": v1,
        "bn2_gamma": g2, "bn2_beta": bt2, "bn2_mean": m2, "bn2_var": v2,
    }


# ----------------------------------------------------------------------------
if __name__ == "__main__":
    # UpBlock(in_channels1=8, in_channels2=4, out_channels=8, dropout_p=0.0)
    N, C1, C2, COUT = 2, 8, 4, 8
    H1 = W1 = 16          # x1 spatial (low-res path)
    H2 = W2 = 32          # x2 spatial (skip connection, 2x)

    key = jax.random.PRNGKey(0)
    k1, k2, kp = jax.random.split(key, 3)
    x1 = jax.random.normal(k1, (N, C1, H1, W1), jnp.float32)   # NCHW
    x2 = jax.random.normal(k2, (N, C2, H2, W2), jnp.float32)   # NCHW
    params = init_params(kp, C1, C2, COUT)

    out = jax.jit(up_block_forward)(x1, x2, params)
    out = jax.block_until_ready(out)
    assert out.shape == (N, COUT, H2, W2), out.shape
    print("KERNEL_OK")
</pallas_src>

<mosaic_0001>
module attributes {stable_mosaic.version = 11 : i64} {
  func.func @_up_block_kernel(%arg0: i32, %arg1: memref<1x16x128xbf16, #tpu.memory_space<vmem>>, %arg2: memref<1x32x128xbf16, #tpu.memory_space<vmem>>, %arg3: memref<128x128xbf16, #tpu.memory_space<vmem>>, %arg4: memref<1x128xf32, #tpu.memory_space<vmem>>, %arg5: memref<32x16xbf16, #tpu.memory_space<vmem>>, %arg6: memref<3x256x256xbf16, #tpu.memory_space<vmem>>, %arg7: memref<1x256xf32, #tpu.memory_space<vmem>>, %arg8: memref<1x256xf32, #tpu.memory_space<vmem>>, %arg9: memref<3x256x256xbf16, #tpu.memory_space<vmem>>, %arg10: memref<1x256xf32, #tpu.memory_space<vmem>>, %arg11: memref<1x256xf32, #tpu.memory_space<vmem>>, %arg12: memref<1x32x256xf32, #tpu.memory_space<vmem>>) attributes {dimension_semantics = [#tpu.dimension_semantics<parallel>], iteration_bounds = array<i64: 2>, scalar_prefetch = 0 : i64, scratch_operands = 0 : i64, tpu.core_type = #tpu.core_type<tc>, window_params = [{transform_indices = @transform_0, window_bounds = array<i64: 1, 16, 128>}, {transform_indices = @transform_1, window_bounds = array<i64: 1, 32, 128>}, {pipeline_mode = #tpu.pipeline_mode<synchronous>, transform_indices = @transform_2, window_bounds = array<i64: 128, 128>}, {pipeline_mode = #tpu.pipeline_mode<synchronous>, transform_indices = @transform_3, window_bounds = array<i64: 1, 128>}, {pipeline_mode = #tpu.pipeline_mode<synchronous>, transform_indices = @transform_4, window_bounds = array<i64: 32, 16>}, {pipeline_mode = #tpu.pipeline_mode<synchronous>, transform_indices = @transform_5, window_bounds = array<i64: 3, 256, 256>}, {pipeline_mode = #tpu.pipeline_mode<synchronous>, transform_indices = @transform_6, window_bounds = array<i64: 1, 256>}, {pipeline_mode = #tpu.pipeline_mode<synchronous>, transform_indices = @transform_7, window_bounds = array<i64: 1, 256>}, {pipeline_mode = #tpu.pipeline_mode<synchronous>, transform_indices = @transform_8, window_bounds = array<i64: 3, 256, 256>}, {pipeline_mode = #tpu.pipeline_mode<synchronous>, transform_indices = @transform_9, window_bounds = array<i64: 1, 256>}, {pipeline_mode = #tpu.pipeline_mode<synchronous>, transform_indices = @transform_10, window_bounds = array<i64: 1, 256>}, {transform_indices = @transform_11, window_bounds = array<i64: 1, 32, 256>}]} {
    %c0 = arith.constant 0 : index
    %c0_0 = arith.constant 0 : index
    %c0_1 = arith.constant 0 : index
    %0 = vector.load %arg1[%c0, %c0_0, %c0_1] : memref<1x16x128xbf16, #tpu.memory_space<vmem>>, vector<1x16x128xbf16>
    %1 = vector.shape_cast %0 : vector<1x16x128xbf16> to vector<16x128xbf16>
    %c0_2 = arith.constant 0 : index
    %c0_3 = arith.constant 0 : index
    %2 = vector.load %arg3[%c0_2, %c0_3] : memref<128x128xbf16, #tpu.memory_space<vmem>>, vector<128x128xbf16>
    %cst = arith.constant dense<0.000000e+00> : vector<16x128xf32>
    %3 = tpu.matmul %1, %2, %cst {dimension_numbers = #tpu.dot_dimension_numbers<[1], [0], [0], [1], [0, 0, 1, 1], [], []>} : vector<16x128xbf16>, vector<128x128xbf16>, vector<16x128xf32> -> vector<16x128xf32>
    %c0_4 = arith.constant 0 : index
    %c0_5 = arith.constant 0 : index
    %4 = vector.load %arg5[%c0_4, %c0_5] : memref<32x16xbf16, #tpu.memory_space<vmem>>, vector<32x16xbf16>
    %5 = arith.truncf %3 : vector<16x128xf32> to vector<16x128xbf16>
    %cst_6 = arith.constant dense<0.000000e+00> : vector<32x128xf32>
    %6 = tpu.matmul %4, %5, %cst_6 {dimension_numbers = #tpu.dot_dimension_numbers<[1], [0], [0], [1], [0, 0, 1, 1], [], []>} : vector<32x16xbf16>, vector<16x128xbf16>, vector<32x128xf32> -> vector<32x128xf32>
    %c0_7 = arith.constant 0 : index
    %c0_8 = arith.constant 0 : index
    %7 = vector.load %arg4[%c0_7, %c0_8] : memref<1x128xf32, #tpu.memory_space<vmem>>, vector<1x128xf32>
    %8 = vector.broadcast %7 : vector<1x128xf32> to vector<32x128xf32>
    %9 = arith.addf %6, %8 : vector<32x128xf32>
    %c0_9 = arith.constant 0 : index
    %c0_10 = arith.constant 0 : index
    %c0_11 = arith.constant 0 : index
    %10 = vector.load %arg2[%c0_9, %c0_10, %c0_11] : memref<1x32x128xbf16, #tpu.memory_space<vmem>>, vector<1x32x128xbf16>
    %11 = vector.shape_cast %10 : vector<1x32x128xbf16> to vector<32x128xbf16>
    %12 = arith.truncf %9 : vector<32x128xf32> to vector<32x128xbf16>
    %13 = tpu.concatenate %11, %12 in 1 : vector<32x128xbf16>, vector<32x128xbf16> -> vector<32x256xbf16>
    %cst_12 = arith.constant 0.000000e+00 : bf16
    %14 = vector.broadcast %cst_12 : bf16 to vector<1x256xbf16>
    %15 = tpu.concatenate %14, %13, %14 in 0 : vector<1x256xbf16>, vector<32x256xbf16>, vector<1x256xbf16> -> vector<34x256xbf16>
    %16 = vector.extract_strided_slice %15 {offsets = [0, 0], sizes = [32, 256], strides = [1, 1]} : vector<34x256xbf16> to vector<32x256xbf16>
    %c0_13 = arith.constant 0 : index
    %c0_14 = arith.constant 0 : index
    %c0_15 = arith.constant 0 : index
    %17 = vector.load %arg6[%c0_13, %c0_14, %c0_15] : memref<3x256x256xbf16, #tpu.memory_space<vmem>>, vector<1x256x256xbf16>
    %18 = vector.shape_cast %17 : vector<1x256x256xbf16> to vector<256x256xbf16>
    %cst_16 = arith.constant dense<0.000000e+00> : vector<32x256xf32>
    %19 = tpu.matmul %16, %18, %cst_16 {dimension_numbers = #tpu.dot_dimension_numbers<[1], [0], [0], [1], [0, 0, 1, 1], [], []>} : vector<32x256xbf16>, vector<256x256xbf16>, vector<32x256xf32> -> vector<32x256xf32>
    %20 = vector.extract_strided_slice %15 {offsets = [1, 0], sizes = [32, 256], strides = [1, 1]} : vector<34x256xbf16> to vector<32x256xbf16>
    %c1 = arith.constant 1 : index
    %c0_17 = arith.constant 0 : index
    %c0_18 = arith.constant 0 : index
    %21 = vector.load %arg6[%c1, %c0_17, %c0_18] : memref<3x256x256xbf16, #tpu.memory_space<vmem>>, vector<1x256x256xbf16>
    %22 = vector.shape_cast %21 : vector<1x256x256xbf16> to vector<256x256xbf16>
    %cst_19 = arith.constant dense<0.000000e+00> : vector<32x256xf32>
    %23 = tpu.matmul %20, %22, %cst_19 {dimension_numbers = #tpu.dot_dimension_numbers<[1], [0], [0], [1], [0, 0, 1, 1], [], []>} : vector<32x256xbf16>, vector<256x256xbf16>, vector<32x256xf32> -> vector<32x256xf32>
    %24 = arith.addf %19, %23 : vector<32x256xf32>
    %25 = vector.extract_strided_slice %15 {offsets = [2, 0], sizes = [32, 256], strides = [1, 1]} : vector<34x256xbf16> to vector<32x256xbf16>
    %c2 = arith.constant 2 : index
    %c0_20 = arith.constant 0 : index
    %c0_21 = arith.constant 0 : index
    %26 = vector.load %arg6[%c2, %c0_20, %c0_21] : memref<3x256x256xbf16, #tpu.memory_space<vmem>>, vector<1x256x256xbf16>
    %27 = vector.shape_cast %26 : vector<1x256x256xbf16> to vector<256x256xbf16>
    %cst_22 = arith.constant dense<0.000000e+00> : vector<32x256xf32>
    %28 = tpu.matmul %25, %27, %cst_22 {dimension_numbers = #tpu.dot_dimension_numbers<[1], [0], [0], [1], [0, 0, 1, 1], [], []>} : vector<32x256xbf16>, vector<256x256xbf16>, vector<32x256xf32> -> vector<32x256xf32>
    %29 = arith.addf %24, %28 : vector<32x256xf32>
    %c0_23 = arith.constant 0 : index
    %c0_24 = arith.constant 0 : index
    %30 = vector.load %arg7[%c0_23, %c0_24] : memref<1x256xf32, #tpu.memory_space<vmem>>, vector<1x256xf32>
    %c0_25 = arith.constant 0 : index
    %c0_26 = arith.constant 0 : index
    %31 = vector.load %arg8[%c0_25, %c0_26] : memref<1x256xf32, #tpu.memory_space<vmem>>, vector<1x256xf32>
    %32 = vector.broadcast %30 : vector<1x256xf32> to vector<32x256xf32>
    %33 = arith.mulf %29, %32 : vector<32x256xf32>
    %34 = vector.broadcast %31 : vector<1x256xf32> to vector<32x256xf32>
    %35 = arith.addf %33, %34 : vector<32x256xf32>
    %cst_27 = arith.constant 0.000000e+00 : f32
    %36 = vector.broadcast %cst_27 : f32 to vector<32x256xf32>
    %37 = arith.cmpf oge, %35, %36 : vector<32x256xf32>
    %cst_28 = arith.constant 0.00999999977 : f32
    %38 = vector.broadcast %cst_28 : f32 to vector<32x256xf32>
    %39 = arith.mulf %38, %35 : vector<32x256xf32>
    %40 = arith.select %37, %35, %39 : vector<32x256xi1>, vector<32x256xf32>
    %cst_29 = arith.constant 0.000000e+00 : bf16
    %41 = vector.broadcast %cst_29 : bf16 to vector<1x256xbf16>
    %42 = arith.truncf %40 : vector<32x256xf32> to vector<32x256xbf16>
    %43 = tpu.concatenate %41, %42, %41 in 0 : vector<1x256xbf16>, vector<32x256xbf16>, vector<1x256xbf16> -> vector<34x256xbf16>
    %44 = vector.extract_strided_slice %43 {offsets = [0, 0], sizes = [32, 256], strides = [1, 1]} : vector<34x256xbf16> to vector<32x256xbf16>
    %c0_30 = arith.constant 0 : index
    %c0_31 = arith.constant 0 : index
    %c0_32 = arith.constant 0 : index
    %45 = vector.load %arg9[%c0_30, %c0_31, %c0_32] : memref<3x256x256xbf16, #tpu.memory_space<vmem>>, vector<1x256x256xbf16>
    %46 = vector.shape_cast %45 : vector<1x256x256xbf16> to vector<256x256xbf16>
    %cst_33 = arith.constant dense<0.000000e+00> : vector<32x256xf32>
    %47 = tpu.matmul %44, %46, %cst_33 {dimension_numbers = #tpu.dot_dimension_numbers<[1], [0], [0], [1], [0, 0, 1, 1], [], []>} : vector<32x256xbf16>, vector<256x256xbf16>, vector<32x256xf32> -> vector<32x256xf32>
    %48 = vector.extract_strided_slice %43 {offsets = [1, 0], sizes = [32, 256], strides = [1, 1]} : vector<34x256xbf16> to vector<32x256xbf16>
    %c1_34 = arith.constant 1 : index
    %c0_35 = arith.constant 0 : index
    %c0_36 = arith.constant 0 : index
    %49 = vector.load %arg9[%c1_34, %c0_35, %c0_36] : memref<3x256x256xbf16, #tpu.memory_space<vmem>>, vector<1x256x256xbf16>
    %50 = vector.shape_cast %49 : vector<1x256x256xbf16> to vector<256x256xbf16>
    %cst_37 = arith.constant dense<0.000000e+00> : vector<32x256xf32>
    %51 = tpu.matmul %48, %50, %cst_37 {dimension_numbers = #tpu.dot_dimension_numbers<[1], [0], [0], [1], [0, 0, 1, 1], [], []>} : vector<32x256xbf16>, vector<256x256xbf16>, vector<32x256xf32> -> vector<32x256xf32>
    %52 = arith.addf %47, %51 : vector<32x256xf32>
    %53 = vector.extract_strided_slice %43 {offsets = [2, 0], sizes = [32, 256], strides = [1, 1]} : vector<34x256xbf16> to vector<32x256xbf16>
    %c2_38 = arith.constant 2 : index
    %c0_39 = arith.constant 0 : index
    %c0_40 = arith.constant 0 : index
    %54 = vector.load %arg9[%c2_38, %c0_39, %c0_40] : memref<3x256x256xbf16, #tpu.memory_space<vmem>>, vector<1x256x256xbf16>
    %55 = vector.shape_cast %54 : vector<1x256x256xbf16> to vector<256x256xbf16>
    %cst_41 = arith.constant dense<0.000000e+00> : vector<32x256xf32>
    %56 = tpu.matmul %53, %55, %cst_41 {dimension_numbers = #tpu.dot_dimension_numbers<[1], [0], [0], [1], [0, 0, 1, 1], [], []>} : vector<32x256xbf16>, vector<256x256xbf16>, vector<32x256xf32> -> vector<32x256xf32>
    %57 = arith.addf %52, %56 : vector<32x256xf32>
    %c0_42 = arith.constant 0 : index
    %c0_43 = arith.constant 0 : index
    %58 = vector.load %arg10[%c0_42, %c0_43] : memref<1x256xf32, #tpu.memory_space<vmem>>, vector<1x256xf32>
    %c0_44 = arith.constant 0 : index
    %c0_45 = arith.constant 0 : index
    %59 = vector.load %arg11[%c0_44, %c0_45] : memref<1x256xf32, #tpu.memory_space<vmem>>, vector<1x256xf32>
    %60 = vector.broadcast %58 : vector<1x256xf32> to vector<32x256xf32>
    %61 = arith.mulf %57, %60 : vector<32x256xf32>
    %62 = vector.broadcast %59 : vector<1x256xf32> to vector<32x256xf32>
    %63 = arith.addf %61, %62 : vector<32x256xf32>
    %cst_46 = arith.constant 0.000000e+00 : f32
    %64 = vector.broadcast %cst_46 : f32 to vector<32x256xf32>
    %65 = arith.cmpf oge, %63, %64 : vector<32x256xf32>
    %cst_47 = arith.constant 0.00999999977 : f32
    %66 = vector.broadcast %cst_47 : f32 to vector<32x256xf32>
    %67 = arith.mulf %66, %63 : vector<32x256xf32>
    %68 = arith.select %65, %63, %67 : vector<32x256xi1>, vector<32x256xf32>
    %c0_48 = arith.constant 0 : index
    %c0_49 = arith.constant 0 : index
    %c0_50 = arith.constant 0 : index
    %69 = vector.load %arg12[%c0_48, %c0_49, %c0_50] : memref<1x32x256xf32, #tpu.memory_space<vmem>>, vector<1x32x256xf32>
    %70 = vector.shape_cast %69 : vector<1x32x256xf32> to vector<32x256xf32>
    %71 = vector.shape_cast %68 : vector<32x256xf32> to vector<1x32x256xf32>
    tpu.vector_store %arg12[%c0_48, %c0_49, %c0_50], %71 {strides = array<i32>} : memref<1x32x256xf32, #tpu.memory_space<vmem>>, vector<1x32x256xf32>,
    return
  }
  func.func @transform_0(%arg0: i32) -> (i32, i32, i32) {
    %c0_i32 = arith.constant 0 : i32
    %c0_i32_0 = arith.constant 0 : i32
    %c0_i32_1 = arith.constant 0 : i32
    return %arg0, %c0_i32, %c0_i32_0 : i32, i32, i32
  }
  func.func @transform_1(%arg0: i32) -> (i32, i32, i32) {
    %c0_i32 = arith.constant 0 : i32
    %c0_i32_0 = arith.constant 0 : i32
    %c0_i32_1 = arith.constant 0 : i32
    return %arg0, %c0_i32, %c0_i32_0 : i32, i32, i32
  }
  func.func @transform_2(%arg0: i32) -> (i32, i32) {
    %c0_i32 = arith.constant 0 : i32
    %c0_i32_0 = arith.constant 0 : i32
    %c0_i32_1 = arith.constant 0 : i32
    return %c0_i32, %c0_i32_0 : i32, i32
  }
  func.func @transform_3(%arg0: i32) -> (i32, i32) {
    %c0_i32 = arith.constant 0 : i32
    %c0_i32_0 = arith.constant 0 : i32
    %c0_i32_1 = arith.constant 0 : i32
    return %c0_i32, %c0_i32_0 : i32, i32
  }
  func.func @transform_4(%arg0: i32) -> (i32, i32) {
    %c0_i32 = arith.constant 0 : i32
    %c0_i32_0 = arith.constant 0 : i32
    %c0_i32_1 = arith.constant 0 : i32
    return %c0_i32, %c0_i32_0 : i32, i32
  }
  func.func @transform_5(%arg0: i32) -> (i32, i32, i32) {
    %c0_i32 = arith.constant 0 : i32
    %c0_i32_0 = arith.constant 0 : i32
    %c0_i32_1 = arith.constant 0 : i32
    %c0_i32_2 = arith.constant 0 : i32
    return %c0_i32, %c0_i32_0, %c0_i32_1 : i32, i32, i32
  }
  func.func @transform_6(%arg0: i32) -> (i32, i32) {
    %c0_i32 = arith.constant 0 : i32
    %c0_i32_0 = arith.constant 0 : i32
    %c0_i32_1 = arith.constant 0 : i32
    return %c0_i32, %c0_i32_0 : i32, i32
  }
  func.func @transform_7(%arg0: i32) -> (i32, i32) {
    %c0_i32 = arith.constant 0 : i32
    %c0_i32_0 = arith.constant 0 : i32
    %c0_i32_1 = arith.constant 0 : i32
    return %c0_i32, %c0_i32_0 : i32, i32
  }
  func.func @transform_8(%arg0: i32) -> (i32, i32, i32) {
    %c0_i32 = arith.constant 0 : i32
    %c0_i32_0 = arith.constant 0 : i32
    %c0_i32_1 = arith.constant 0 : i32
    %c0_i32_2 = arith.constant 0 : i32
    return %c0_i32, %c0_i32_0, %c0_i32_1 : i32, i32, i32
  }
  func.func @transform_9(%arg0: i32) -> (i32, i32) {
    %c0_i32 = arith.constant 0 : i32
    %c0_i32_0 = arith.constant 0 : i32
    %c0_i32_1 = arith.constant 0 : i32
    return %c0_i32, %c0_i32_0 : i32, i32
  }
  func.func @transform_10(%arg0: i32) -> (i32, i32) {
    %c0_i32 = arith.constant 0 : i32
    %c0_i32_0 = arith.constant 0 : i32
    %c0_i32_1 = arith.constant 0 : i32
    return %c0_i32, %c0_i32_0 : i32, i32
  }
  func.func @transform_11(%arg0: i32) -> (i32, i32, i32) {
    %c0_i32 = arith.constant 0 : i32
    %c0_i32_0 = arith.constant 0 : i32
    %c0_i32_1 = arith.constant 0 : i32
    return %arg0, %c0_i32, %c0_i32_0 : i32, i32, i32
  }
}

</mosaic_0001>

<bundles_post_ra>
// kernel: tile.23
= control target key start
LH: loop header
LB: loop body
LE: loop exit
PB: predicated region body
PF: predicated region fallthrough
CT: control target
= control target key end

     0   :  { %s40_s0 = inlined_call_operand.vmem [shape: f32[8], index: 0, kind: input, shape index: {}]   ;;  %s41_s1 = inlined_call_operand.vmem [shape: f32[32,8], index: 1, kind: output, shape index: {}]  }
   0x1   :  { %v4_v0 = vld [vmem:[%s40_s0] ss:$0 sm:$0xff] }
   0x2   :  { %5 = vst [vmem:[%s41_s1] sm:$0xff] %v4_v0 }
   0x3   :  { %12 = vst [vmem:[%s41_s1 + $0x8] sm:$0xff] %v4_v0 }
   0x4   :  { %13 = vst [vmem:[%s41_s1 + $0x10] sm:$0xff] %v4_v0 }
   0x5   :  { %14 = vst [vmem:[%s41_s1 + $0x18] sm:$0xff] %v4_v0 }

// kernel: tile.24
= control target key start
LH: loop header
LB: loop body
LE: loop exit
PB: predicated region body
PF: predicated region fallthrough
CT: control target
= control target key end

     0   :  { %s7_s6 = smov 3  ;;  %s21_s9 = smov 3  ;;  %vm4_vm0 = vcmask 64512   ;;  %vm11_vm1 = vcmask 1048512   ;;  %vm18_vm2 = vcmask 982912   ;;  %vm25_vm3 = vcmask 917312   ;;  %s233_s0 = inlined_call_operand.vmem [shape: f32[32,8], index: 0, kind: input, shape index: {}]   ;;  %s234_s1 = inlined_call_operand.vmem [shape: f32[1,256], index: 1, kind: output, shape index: {}]  }
   0x1   :  { %v123_v0 = vld [vmem:[%s233_s0 + $0xf] ss:$16 sm:%s7_s6]   ;;  %s154_s10 = smov 120   ;;  %v125_v1 = vld [vmem:[%s233_s0 + $0xd] ss:$16 sm:%s21_s9]   ;;  %s155_s13 = smov 104  }
   0x2   :  { %9 = vrot.lane.b32.xlu0 %v123_v0, %s154_s10  ;;  %23 = vrot.lane.b32.xlu1 %v125_v1, %s155_s13  ;;  %s14_s14 = smov 3  ;;  %s28_s15 = smov 3  ;;  %vm32_vm4 = vcmask 851712   ;;  %vm39_vm5 = vcmask 786112   ;;  %vm46_vm6 = vcmask 720512   ;;  %vm53_vm7 = vcmask 654912  }
   0x3   :  { %v124_v2 = vld [vmem:[%s233_s0 + $0xe] ss:$16 sm:%s14_s14]   ;;  %v126_v3 = vld [vmem:[%s233_s0 + $0xc] ss:$16 sm:%s28_s15]   ;;  %s35_s20 = smov 3  ;;  %s156_s23 = smov 112  }
   0x4   :  { %v127_v4 = vld [vmem:[%s233_s0 + $0xb] ss:$16 sm:%s35_s20]   ;;  %s157_s24 = smov 88   ;;  %s158_s25 = smov 96   ;;  %vm60_vm8 = vcmask 589312   ;;  %vm67_vm9 = vcmask 523712  }
   0x5   :  { %37 = vrot.lane.b32.xlu2 %v127_v4, %s157_s24  ;;  %s49_s26 = smov 3  ;;  %s42_s27 = smov 3  ;;  %vm74_vm10 = vcmask 458112   ;;  %vm81_vm11 = vcmask 392512   ;;  %vm88_vm12 = vcmask 326912   ;;  %vm95_vm13 = vcmask 261312  }
   0x6   :  { %s56_s28 = smov 3  ;;  %v129_v5 = vld [vmem:[%s233_s0 + $0x9] ss:$16 sm:%s49_s26]   ;;  %v128_v6 = vld [vmem:[%s233_s0 + $0xa] ss:$16 sm:%s42_s27]   ;;  %s159_s6 = smov 72  }
   0x7   :  { %v130_v7 = vld [vmem:[%s233_s0 + $0x8] ss:$16 sm:%s56_s28]   ;;  %s160_s7 = smov 80   ;;  %s161_s8 = smov 64   ;;  %vm102_vm14 = vcmask 195712   ;;  %vm109_vm15 = vcmask 130112  }
   0x8   :  { %s70_s9 = smov 3  ;;  %s63_s10 = smov 3 }
   0x9   :  { %s77_s11 = smov 3  ;;  %v132_v8 = vld [vmem:[%s233_s0 + $0x6] ss:$16 sm:%s70_s9]   ;;  %v131_v9 = vld [vmem:[%s233_s0 + $0x7] ss:$16 sm:%s63_s10]   ;;  %s162_s18 = smov 48  }
   0xa   :  { %16 = vrot.lane.b32.xlu0 %v124_v2, %s156_s23  ;;  %30 = vrot.lane.b32.xlu1 %v126_v3, %s158_s25  ;;  %v133_v10 = vld [vmem:[%s233_s0 + $0x5] ss:$16 sm:%s77_s11]   ;;  %s163_s19 = smov 56   ;;  %s164_s20 = smov 40  }
   0xb   :  { %s91_s21 = smov 3  ;;  %s84_s22 = smov 3 }
   0xc   :  { %s98_s23 = smov 3  ;;  %v135_v11 = vld [vmem:[%s233_s0 + $0x3] ss:$16 sm:%s91_s21]   ;;  %v134_v12 = vld [vmem:[%s233_s0 + $0x4] ss:$16 sm:%s84_s22]   ;;  %s165_s30 = smov 24  }
   0xd   :  { %44 = vrot.lane.b32.xlu2 %v128_v6, %s160_s7  ;;  %v136_v13 = vld [vmem:[%s233_s0 + $0x2] ss:$16 sm:%s98_s23]   ;;  %s166_s2 = smov 32   ;;  %s167_s3 = smov 16  }
   0xe   :  { %s105_s4 = smov 3  ;;  %s168_s7 = smov 8  }
   0xf   :  { %v137_v14 = vld [vmem:[%s233_s0 + $0x1] ss:$16 sm:%s105_s4]  }
  0x12   :  { %51 = vrot.lane.b32.xlu0 %v129_v5, %s159_s6  ;;  %58 = vrot.lane.b32.xlu1 %v130_v7, %s161_s8  ;;  %s2_s8 = smov 3 }
  0x13   :  { %v3_v15 = vld [vmem:[%s233_s0] ss:$16 sm:%s2_s8]  }
  0x14   :  { %5 = vst.msk [vmem:[#allocation0] ss:$8 sm:$0x3] %vm4_vm0, %v3_v15  }
  0x15   :  { %65 = vrot.lane.b32.xlu2 %v131_v9, %s163_s19 }
  0x1a   :  { %72 = vrot.lane.b32.xlu0 %v132_v8, %s162_s18  ;;  %79 = vrot.lane.b32.xlu1 %v133_v10, %s164_s20 }
  0x1d   :  { %86 = vrot.lane.b32.xlu2 %v134_v12, %s166_s2 }
  0x22   :  { %93 = vrot.lane.b32.xlu0 %v135_v11, %s165_s30  ;;  %100 = vrot.lane.b32.xlu1 %v136_v13, %s167_s3 }
  0x25   :  { %107 = vrot.lane.b32.xlu2 %v137_v14, %s168_s7 }
  0x5f   :  { %v38_v16 = vpop.permute.xlu2 %37  }
  0x67   :  { %v45_v17 = vpop.permute.xlu2 %44  }
  0x6f   :  { %v66_v19 = vpop.permute.xlu2 %65  }
  0x74   :  { %v10_v18 = vpop.permute.xlu0 %9   ;;  %v24_v20 = vpop.permute.xlu1 %23  }
  0x75   :  { %12 = vst.msk [vmem:[#allocation0] ss:$8 sm:$0x3] %vm11_vm1, %v10_v18  }
  0x77   :  { %v87_v22 = vpop.permute.xlu2 %86  }
  0x7c   :  { %v17_v21 = vpop.permute.xlu0 %16   ;;  %v31_v23 = vpop.permute.xlu1 %30  }
  0x7d   :  { %19 = vst.msk [vmem:[#allocation0] ss:$8 sm:$0x3] %vm18_vm2, %v17_v21  }
  0x7e   :  { %26 = vst.msk [vmem:[#allocation0] ss:$8 sm:$0x3] %vm25_vm3, %v24_v20  }
  0x7f   :  { %33 = vst.msk [vmem:[#allocation0] ss:$8 sm:$0x3] %vm32_vm4, %v31_v23   ;;  %v108_v25 = vpop.permute.xlu2 %107  }
  0x80   :  { %40 = vst.msk [vmem:[#allocation0] ss:$8 sm:$0x3] %vm39_vm5, %v38_v16  }
  0x81   :  { %47 = vst.msk [vmem:[#allocation0] ss:$8 sm:$0x3] %vm46_vm6, %v45_v17  }
  0x84   :  { %v52_v24 = vpop.permute.xlu0 %51   ;;  %v59_v26 = vpop.permute.xlu1 %58  }
  0x85   :  { %54 = vst.msk [vmem:[#allocation0] ss:$8 sm:$0x3] %vm53_vm7, %v52_v24  }
  0x86   :  { %61 = vst.msk [vmem:[#allocation0] ss:$8 sm:$0x3] %vm60_vm8, %v59_v26  }
  0x87   :  { %68 = vst.msk [vmem:[#allocation0] ss:$8 sm:$0x3] %vm67_vm9, %v66_v19  }
  0x8c   :  { %v73_v27 = vpop.permute.xlu0 %72   ;;  %v80_v28 = vpop.permute.xlu1 %79  }
  0x8d   :  { %75 = vst.msk [vmem:[#allocation0] ss:$8 sm:$0x3] %vm74_vm10, %v73_v27  }
  0x8e   :  { %82 = vst.msk [vmem:[#allocation0] ss:$8 sm:$0x3] %vm81_vm11, %v80_v28  }
  0x8f   :  { %89 = vst.msk [vmem:[#allocation0] ss:$8 sm:$0x3] %vm88_vm12, %v87_v22  }
  0x94   :  { %v94_v29 = vpop.permute.xlu0 %93   ;;  %v101_v30 = vpop.permute.xlu1 %100  }
  0x95   :  { %96 = vst.msk [vmem:[#allocation0] ss:$8 sm:$0x3] %vm95_vm13, %v94_v29  }
  0x96   :  { %103 = vst.msk [vmem:[#allocation0] ss:$8 sm:$0x3] %vm102_vm14, %v101_v30  }
  0x97   :  { %110 = vst.msk [vmem:[#allocation0] ss:$8 sm:$0x3] %vm109_vm15, %v108_v25  }
  0x9e   :  { %v113_v31 = vld [vmem:[#allocation0] sm:$0x1]  ;;  %v118_v32 = vld [vmem:[#allocation0 + $0x8] sm:$0x1] }
  0x9f   :  { %116 = vst [vmem:[%s234_s1] sm:$0x1] %v113_v31 }
  0xa0   :  { %138 = vst [vmem:[%s234_s1 + $0x1] sm:$0x1] %v118_v32 }

// kernel: up_block_forward.1
= control target key start
LH: loop header
LB: loop body
LE: loop exit
PB: predicated region body
PF: predicated region fallthrough
CT: control target
= control target key end

     0   :  { %s3859_s17 = smov 0   ;;  %s5451_s0 = inlined_call_operand.vmem [shape: bf16[2,16,128], index: 0, kind: input, shape index: {}]   ;;  %s5452_s1 = inlined_call_operand.vmem [shape: bf16[2,32,128], index: 1, kind: input, shape index: {}]   ;;  %s5453_s2 = inlined_call_operand.vmem [shape: bf16[128,128], index: 2, kind: input, shape index: {}]   ;;  %s5454_s3 = inlined_call_operand.vmem [shape: f32[1,128], index: 3, kind: input, shape index: {}]   ;;  %s5455_s4 = inlined_call_operand.vmem [shape: bf16[32,16], index: 4, kind: input, shape index: {}]   ;;  %s5456_s5 = inlined_call_operand.vmem [shape: bf16[3,256,256], index: 5, kind: input, shape index: {}]   ;;  %s5457_s6 = inlined_call_operand.vmem [shape: f32[1,256], index: 6, kind: input, shape index: {}]   ;;  %s5458_s7 = inlined_call_operand.vmem [shape: f32[1,256], index: 7, kind: input, shape index: {}]   ;;  %s5459_s8 = inlined_call_operand.vmem [shape: bf16[3,256,256], index: 8, kind: input, shape index: {}]   ;;  %s5460_s9 = inlined_call_operand.vmem [shape: f32[1,256], index: 9, kind: input, shape index: {}]   ;;  %s5461_s10 = inlined_call_operand.vmem [shape: f32[1,256], index: 10, kind: input, shape index: {}]   ;;  %s5462_s11 = inlined_call_operand.vmem [shape: f32[2,32,256], index: 11, kind: output, shape index: {}]  }
   0x1 LB: > { %s2603_s18 = sadd.s32 4294967295, %s3797_s17   ;;  %p2607_p0 = scmp.ge.s32.totalorder %s3797_s17, 1  ;;  %s3797_s17 = sphi %s3859_s17, %s21_s17  }
   0x2   : > { %p347_p1 = scmp.lt.s32.totalorder %s3797_s17, 3 }
   0x4   : > { %p348_p2 = pnand %p2607_p0, %p347_p1 }
   0x5   : > { %p392_p3 = scmp.lt.s32.totalorder (!%p348_p2), %s2603_s18, 1 }
   0x6   : > { %351 = sbr.rel (%p348_p2) target bundleno = 849 (0x351), region = 64 }
   0xb   : > { %v3577_v0 = vld [vmem:[%s5453_s2 + $0x38] sm:$0xff]  ;;  %v3576_v1 = vld [vmem:[%s5453_s2 + $0x30] sm:$0xff]  ;;  %v3575_v2 = vld [vmem:[%s5453_s2 + $0x28] sm:$0xff]  ;;  %s5466_s18 = smov (!%p392_p3, %s2603_s18), 1  ;;  %vm513_vm0 = vcmask 130048   ;;  %vm604_vm2 = vcmask 1040384  }
   0xc   : > { %480 = vmatpush.bf16.msra.mxu0 %v3577_v0  ;;  %v3574_v3 = vld [vmem:[%s5453_s2 + $0x20] sm:$0xff]  ;;  %v3573_v4 = vld [vmem:[%s5453_s2 + $0x18] sm:$0xff]  ;;  %v3572_v5 = vld [vmem:[%s5453_s2 + $0x10] sm:$0xff]  ;;  %s3566_s14 = sshll.u32 %s5466_s18, 3  ;;  %s3567_s24 = sshll.u32 %s5466_s18, 4  ;;  %vm1229_vm5 = vcmask 1046528  }
   0xd   : > { %v3571_v6 = vld [vmem:[%s5453_s2 + $0x8] sm:$0xff]  ;;  %v3570_v7 = vld [vmem:[%s5453_s2] sm:$0xff]  ;;  %s396_s21 = scalar_lea.vmem %s5451_s0, %s3566_s14  ;;  %v2758_v9 = vld [vmem:[%s5456_s5 + $0x170] sm:$0xf]  ;;  %s401_s27 = scalar_lea.vmem %s5452_s1, %s3567_s24  ;;  %vm567_vm1 = vsmask.f32 256 }
   0xe   : > { %v3569_v8 = vld [vmem:[%s396_s21] sm:$0xff]  ;;  %v3629_v10 = vld [vmem:[%s5456_s5 + $0x174] sm:$0xf0]  ;;  %v3627_v13 = vld [vmem:[%s5456_s5 + $0x164] sm:$0xf0]  ;;  %s3568_s26 = sshll.u32 %s5466_s18, 6 }
   0xf   : > { %v2759_v11 = vor.u32 %v3629_v10, %v2758_v9  ;;  %v2750_v12 = vld [vmem:[%s5456_s5 + $0x160] sm:$0xf]  ;;  %v2742_v16 = vld [vmem:[%s5456_s5 + $0x150] sm:$0xf]  ;;  %v3625_v17 = vld [vmem:[%s5456_s5 + $0x154] sm:$0xf0]  ;;  %s5419_s29 = scalar_lea.vmem %s5462_s11, %s3568_s26 }
  0x10   : > { %481 = vmatpush.bf16.msra.mxu0 %v3576_v1  ;;  %v2751_v15 = vor.u32 %v3627_v13, %v2750_v12  ;;  %v3628_v18 = vld [vmem:[%s5456_s5 + $0x174] sm:$0xf]  ;;  %v2760_v19 = vld [vmem:[%s5456_s5 + $0x178] sm:$0xf0]  ;;  %v2743_v20 = vor.u32 %v3625_v17, %v2742_v16  ;;  %v2734_v21 = vld [vmem:[%s5456_s5 + $0x140] sm:$0xf] }
  0x11   : > { %880 = vmatpush.bf16.msra.mxu2 %v2759_v11  ;;  %v3623_v22 = vld [vmem:[%s5456_s5 + $0x144] sm:$0xf0]  ;;  %v2763_v24 = vor.u32 %v3628_v18, %v2760_v19  ;;  %v3626_v26 = vld [vmem:[%s5456_s5 + $0x164] sm:$0xf]  ;;  %v2752_v27 = vld [vmem:[%s5456_s5 + $0x168] sm:$0xf0] }
  0x12   : > { %v2735_v28 = vor.u32 %v3623_v22, %v2734_v21  ;;  %v3578_v29 = vld [vmem:[%s5455_s4] sm:$0xff]  ;;  %v2755_v30 = vor.u32 %v3626_v26, %v2752_v27  ;;  %v3624_v31 = vld [vmem:[%s5456_s5 + $0x154] sm:$0xf]  ;;  %v2744_v32 = vld [vmem:[%s5456_s5 + $0x158] sm:$0xf0] }
  0x13   : > { %v2747_v33 = vor.u32 %v3624_v31, %v2744_v32  ;;  %v3622_v34 = vld [vmem:[%s5456_s5 + $0x144] sm:$0xf]  ;;  %v2736_v35 = vld [vmem:[%s5456_s5 + $0x148] sm:$0xf0]  ;;  %v2726_v38 = vld [vmem:[%s5456_s5 + $0x130] sm:$0xf] }
  0x14   : > { %482 = vmatpush.bf16.msra.mxu0 %v3575_v2  ;;  %v2739_v36 = vor.u32 %v3622_v34, %v2736_v35  ;;  %v3579_v37 = vld [vmem:[%s5455_s4 + $0x8] sm:$0xff]  ;;  %v3621_v39 = vld [vmem:[%s5456_s5 + $0x134] sm:$0xf0]  ;;  %v3620_v40 = vld [vmem:[%s5456_s5 + $0x134] sm:$0xf] }
  0x15   : > { %881 = vmatpush.bf16.msra.mxu2 %v2751_v15  ;;  %v3580_v41 = vld [vmem:[%s401_s27] sm:$0xff]  ;;  %v2727_v42 = vor.u32 %v3621_v39, %v2726_v38  ;;  %v2728_v43 = vld [vmem:[%s5456_s5 + $0x138] sm:$0xf0]  ;;  %v3581_v44 = vld [vmem:[%s401_s27 + $0x8] sm:$0xff]  ;;  %vm675_vm4 = vsmask.f32 7424 }
  0x16   : > { %v2731_v45 = vor.u32 %v3620_v40, %v2728_v43  ;;  %v2718_v46 = vld [vmem:[%s5456_s5 + $0x120] sm:$0xf]  ;;  %v3619_v47 = vld [vmem:[%s5456_s5 + $0x124] sm:$0xf0]  ;;  %v3618_v48 = vld [vmem:[%s5456_s5 + $0x124] sm:$0xf] }
  0x17   : > { %v2719_v49 = vor.u32 %v3619_v47, %v2718_v46  ;;  %v2720_v50 = vld [vmem:[%s5456_s5 + $0x128] sm:$0xf0]  ;;  %v569_v51 = vshrl.u32 %v3580_v41, 16  ;;  %v572_v53 = vshll.u32 %v3580_v41, 16  ;;  %v583_v54 = vshrl.u32 %v3581_v44, 16  ;;  %vm3985_vm3 = vmand %vm604_vm2, %vm567_vm1 }
  0x18   : > { %483 = vmatpush.bf16.msra.mxu0 %v3574_v3  ;;  %v2723_v52 = vor.u32 %v3618_v48, %v2720_v50  ;;  %v2710_v56 = vld [vmem:[%s5456_s5 + $0x110] sm:$0xf]  ;;  %v3617_v59 = vld [vmem:[%s5456_s5 + $0x114] sm:$0xf0]  ;;  %v3616_v60 = vld [vmem:[%s5456_s5 + $0x114] sm:$0xf] }
  0x19   : > { %882 = vmatpush.bf16.msra.mxu2 %v2743_v20  ;;  %v571_v55 = vrot.slane %v569_v51, 7  ;;  %v3982_v57 = vrot.slane %v583_v54, 7  ;;  %v586_v62 = vshll.u32 %v3581_v44, 16  ;;  %v2711_v63 = vor.u32 %v3617_v59, %v2710_v56  ;;  %v2712_v0 = vld [vmem:[%s5456_s5 + $0x118] sm:$0xf0] }
  0x1a   : > { %v2715_v1 = vor.u32 %v3616_v60, %v2712_v0  ;;  %v2822_v13 = vld [vmem:[%s5456_s5 + $0x1f0] sm:$0xf]  ;;  %v3644_v15 = vld [vmem:[%s5456_s5 + $0x1f4] sm:$0xf]  ;;  %v2824_v17 = vld [vmem:[%s5456_s5 + $0x1f8] sm:$0xf0] }
  0x1b   : > { %v574_v61 = vor.u32 %v572_v53, %v571_v55  ;;  %v588_v2 = vor.u32 %v586_v62, %v3982_v57  ;;  %v2827_v20 = vor.u32 %v3644_v15, %v2824_v17  ;;  %v2886_v21 = vld [vmem:[%s5456_s5 + $0x70] sm:$0xf]  ;;  %v3597_v22 = vld [vmem:[%s5456_s5 + $0x74] sm:$0xf0]  ;;  %v3596_v26 = vld [vmem:[%s5456_s5 + $0x74] sm:$0xf] }
  0x1c   : > { %484 = vmatpush.bf16.msra.mxu0 %v3573_v4  ;;  %v2702_v4 = vld [vmem:[%s5456_s5 + $0x100] sm:$0xf]  ;;  %v2888_v27 = vld [vmem:[%s5456_s5 + $0x78] sm:$0xf0]  ;;  %v3642_v31 = vld [vmem:[%s5456_s5 + $0x1e4] sm:$0xf] }
  0x1d   : > { %883 = vmatpush.bf16.msra.mxu2 %v2735_v28  ;;  %v4001_v3 = vsel %vm3985_vm3, 0, %v574_v61  ;;  %v4016_v9 = vsel %vm567_vm1, %v571_v55, %v588_v2  ;;  %v2891_v28 = vor.u32 %v3596_v26, %v2888_v27  ;;  %v2816_v34 = vld [vmem:[%s5456_s5 + $0x1e8] sm:$0xf0]  ;;  %v3594_v38 = vld [vmem:[%s5456_s5 + $0x64] sm:$0xf] }
  0x1e   : > { %v677_v10 = vshrl.u32 %v4001_v3, 16  ;;  %v679_v11 = vshll.u32 %v4001_v3, 16  ;;  %v684_v19 = vshll.u32 %v4016_v9, 16  ;;  %v2819_v35 = vor.u32 %v3642_v31, %v2816_v34  ;;  %v2880_v40 = vld [vmem:[%s5456_s5 + $0x68] sm:$0xf0] }
  0x1f   : > { %v2883_v41 = vor.u32 %v3594_v38, %v2880_v40  ;;  %v3641_v43 = vld [vmem:[%s5456_s5 + $0x1d4] sm:$0xf0]  ;;  %v3640_v44 = vld [vmem:[%s5456_s5 + $0x1d4] sm:$0xf]  ;;  %v2808_v46 = vld [vmem:[%s5456_s5 + $0x1d8] sm:$0xf0] }
  0x20   : > { %485 = vmatpush.bf16.msra.mxu0 %v3572_v5  ;;  %v3615_v5 = vld [vmem:[%s5456_s5 + $0x104] sm:$0xf0]  ;;  %v681_v18 = vrot.slane %v679_v11, 1  ;;  %v2811_v47 = vor.u32 %v3640_v44, %v2808_v46  ;;  %v2870_v48 = vld [vmem:[%s5456_s5 + $0x50] sm:$0xf] }
  0x21   : > { %884 = vmatpush.bf16.msra.mxu2 %v2727_v42  ;;  %v2806_v42 = vld [vmem:[%s5456_s5 + $0x1d0] sm:$0xf]  ;;  %v3592_v50 = vld [vmem:[%s5456_s5 + $0x54] sm:$0xf]  ;;  %v2798_v54 = vld [vmem:[%s5456_s5 + $0x1c0] sm:$0xf] }
  0x22   : > { %v3639_v55 = vld [vmem:[%s5456_s5 + $0x1c4] sm:$0xf0]  ;;  %v3638_v56 = vld [vmem:[%s5456_s5 + $0x1c4] sm:$0xf]  ;;  %v2800_v60 = vld [vmem:[%s5456_s5 + $0x1c8] sm:$0xf0] }
  0x23   : > { %v2799_v59 = vor.u32 %v3639_v55, %v2798_v54  ;;  %v2803_v61 = vor.u32 %v3638_v56, %v2800_v60  ;;  %v2862_v62 = vld [vmem:[%s5456_s5 + $0x40] sm:$0xf]  ;;  %v3590_v0 = vld [vmem:[%s5456_s5 + $0x44] sm:$0xf]  ;;  %v2864_v2 = vld [vmem:[%s5456_s5 + $0x48] sm:$0xf0] }
  0x24   : > { %486 = vmatpush.bf16.msra.mxu0 %v3571_v6  ;;  %v3614_v6 = vld [vmem:[%s5456_s5 + $0x104] sm:$0xf]  ;;  %v2854_v15 = vld [vmem:[%s5456_s5 + $0x30] sm:$0xf]  ;;  %v3588_v17 = vld [vmem:[%s5456_s5 + $0x34] sm:$0xf] }
  0x25   : > { %885 = vmatpush.bf16.msra.mxu2 %v2719_v49  ;;  %v3593_v49 = vld [vmem:[%s5456_s5 + $0x54] sm:$0xf0]  ;;  %v2846_v31 = vld [vmem:[%s5456_s5 + $0x20] sm:$0xf]  ;;  %v2838_v44 = vld [vmem:[%s5456_s5 + $0x10] sm:$0xf] }
  0x26   : > { %v2871_v51 = vor.u32 %v3593_v49, %v2870_v48  ;;  %v3633_v38 = vld [vmem:[%s5456_s5 + $0x194] sm:$0xf0]  ;;  %v3584_v46 = vld [vmem:[%s5456_s5 + $0x14] sm:$0xf]  ;;  %v2840_v48 = vld [vmem:[%s5456_s5 + $0x18] sm:$0xf0] }
  0x27   : > { %v2766_v49 = vld [vmem:[%s5456_s5 + $0x180] sm:$0xf]  ;;  %v2768_v54 = vld [vmem:[%s5456_s5 + $0x188] sm:$0xf0]  ;;  %v3583_v60 = vld [vmem:[%s5456_s5 + $0x4] sm:$0xf0] }
  0x28   : > { %487 = vmatpush.bf16.msra.mxu0 %v3570_v7  ;;  %v2703_v7 = vor.u32 %v3615_v5, %v2702_v4  ;;  %v4124_v4 = vsel %vm3985_vm3, %v3982_v57, 0  ;;  %v700_v5 = vshrl.u32 %v4016_v9, 16  ;;  %v2792_v57 = vld [vmem:[%s5456_s5 + $0x1b8] sm:$0xf0]  ;;  %v2830_v55 = vld [vmem:[%s5456_s5] sm:$0xf] }
  0x29   : > { %886 = vmatpush.bf16.msra.mxu2 %v2711_v63  ;;  %v3591_v63 = vld [vmem:[%s5456_s5 + $0x44] sm:$0xf0]  ;;  %v3342_v58 = vld [vmem:[%s5459_s8 + $0x80] sm:$0xf] }
  0x2b   : > { %488 = vmatmul.bf16.vlgmr.msra.gmra.mxu0 %v3569_v8  ;;  %v2704_v8 = vld [vmem:[%s5456_s5 + $0x108] sm:$0xf0] }
  0x2c   : > { %v2707_v12 = vor.u32 %v3614_v6, %v2704_v8  ;;  %937 = vmatpush.bf16.msrb.mxu0 %v2827_v20  ;;  %v2867_v6 = vor.u32 %v3590_v0, %v2864_v2  ;;  %v3637_v8 = vld [vmem:[%s5456_s5 + $0x1b4] sm:$0xf0]  ;;  %v2856_v20 = vld [vmem:[%s5456_s5 + $0x38] sm:$0xf0] }
  0x2d   : > { %887 = vmatpush.bf16.msra.mxu2 %v2703_v7  ;;  %v2790_v7 = vld [vmem:[%s5456_s5 + $0x1b0] sm:$0xf] }
  0x2e   : > { %v2791_v11 = vor.u32 %v3637_v8, %v2790_v7  ;;  %v3613_v7 = vld [vmem:[%s5456_s5 + $0xf4] sm:$0xf0]  ;;  %v3612_v8 = vld [vmem:[%s5456_s5 + $0xf4] sm:$0xf] }
  0x30   : > { %938 = vmatpush.bf16.msrb.mxu0 %v2819_v35  ;;  %v2848_v35 = vld [vmem:[%s5456_s5 + $0x28] sm:$0xf0] }
  0x34   : > { %939 = vmatpush.bf16.msrb.mxu0 %v2811_v47 }
  0x38   : > { %940 = vmatpush.bf16.msrb.mxu0 %v2803_v61  ;;  %v3582_v61 = vld [vmem:[%s5456_s5 + $0x4] sm:$0xf] }
  0xa8   : > { %v489_v14 = vpop.f32.mrf.mxu0 }
  0xb0   : > { %v491_v23 = vpop.f32.mrf.mxu0 }
  0xb1   : > { %v498_v25 = vpack.c.bf16 %v491_v23, %v489_v14  ;;  %v3645_v14 = vld [vmem:[%s5456_s5 + $0x1f4] sm:$0xf0]  ;;  %v682_v23 = vor.u32 %v681_v18, %v677_v10  ;;  %v3636_v10 = vld [vmem:[%s5456_s5 + $0x1b4] sm:$0xf] }
  0xb2   : > { %v2823_v16 = vor.u32 %v3645_v14, %v2822_v13  ;;  %v704_v13 = vshll.u32 %v4124_v4, 16  ;;  %v2795_v14 = vor.u32 %v3636_v10, %v2792_v57 }
  0xb3   : > { %527 = vmatpush.bf16.msra.mxu1 %v498_v25  ;;  %v2887_v25 = vor.u32 %v3597_v22, %v2886_v21  ;;  %v2859_v21 = vor.u32 %v3588_v17, %v2856_v20  ;;  %v2782_v22 = vld [vmem:[%s5456_s5 + $0x1a0] sm:$0xf] }
  0xb4   : > { %899 = vmatpush.bf16.msra.mxu3 %v2823_v16  ;;  %v3589_v16 = vld [vmem:[%s5456_s5 + $0x34] sm:$0xf0]  ;;  %v706_v18 = vrot.slane %v704_v13, 1  ;;  %941 = vmatpush.bf16.msrb.mxu0 %v2795_v14  ;;  %v2942_v14 = vld [vmem:[%s5456_s5 + $0xe0] sm:$0xf] }
  0xb5   : > { %1116 = vmatpush.bf16.msrb.mxu2 %v2887_v25  ;;  %v4165_v25 = vld [vmem:[%s5454_s3] ss:$0 sm:$0xff] }
  0xb6   : > { %2658 = vmatmul.msk.bf16.vlgmr.msra.gmra.mxu1 %vm513_vm0, %v3578_v29  ;;  %v2814_v29 = vld [vmem:[%s5456_s5 + $0x1e0] sm:$0xf] }
  0xb7   : > { %918 = vmatpush.bf16.msrb.mxu1 %v2763_v24  ;;  %v4039_v24 = vrot.slane %v684_v19, 1  ;;  %v2855_v19 = vor.u32 %v3589_v16, %v2854_v15  ;;  %v3611_v15 = vld [vmem:[%s5456_s5 + $0xe4] sm:$0xf0]  ;;  %v3610_v16 = vld [vmem:[%s5456_s5 + $0xe4] sm:$0xf] }
  0xb8   : > { %v2943_v17 = vor.u32 %v3611_v15, %v2942_v14 }
  0xb9   : > { %v687_v32 = vsel %vm675_vm4, %v682_v23, %v4039_v24  ;;  %v3635_v23 = vld [vmem:[%s5456_s5 + $0x1a4] sm:$0xf0] }
  0xba   : > { %888 = vmatmul.bf16.vlgmr.msra.gmra.mxu2 %v687_v32 }
  0xbb   : > { %919 = vmatpush.bf16.msrb.mxu1 %v2755_v30  ;;  %v3643_v30 = vld [vmem:[%s5456_s5 + $0x1e4] sm:$0xf0] }
  0xbf   : > { %920 = vmatpush.bf16.msrb.mxu1 %v2747_v33  ;;  %v2815_v33 = vor.u32 %v3643_v30, %v2814_v29  ;;  %v2784_v29 = vld [vmem:[%s5456_s5 + $0x1a8] sm:$0xf0] }
  0xc1   : > { %900 = vmatpush.bf16.msra.mxu3 %v2815_v33  ;;  %v3586_v33 = vld [vmem:[%s5456_s5 + $0x24] sm:$0xf] }
  0xc3   : > { %921 = vmatpush.bf16.msrb.mxu1 %v2739_v36  ;;  %v2878_v36 = vld [vmem:[%s5456_s5 + $0x60] sm:$0xf] }
  0xc6   : > { %2659 = vmatmul.msk.bf16.gmra.mxu1 %vm513_vm0, %v3579_v37  ;;  %v3595_v37 = vld [vmem:[%s5456_s5 + $0x64] sm:$0xf0] }
  0xc7   : > { %922 = vmatpush.bf16.msrb.mxu1 %v2731_v45  ;;  %v2879_v39 = vor.u32 %v3595_v37, %v2878_v36  ;;  %v2807_v45 = vor.u32 %v3641_v43, %v2806_v42  ;;  %v2851_v36 = vor.u32 %v3586_v33, %v2848_v35  ;;  %v2774_v37 = vld [vmem:[%s5456_s5 + $0x190] sm:$0xf]  ;;  %v2928_v33 = vld [vmem:[%s5456_s5 + $0xc8] sm:$0xf0] }
  0xc8   : > { %v2775_v40 = vor.u32 %v3633_v38, %v2774_v37 }
  0xc9   : > { %1117 = vmatpush.bf16.msrb.mxu2 %v2879_v39  ;;  %901 = vmatpush.bf16.msra.mxu3 %v2807_v45  ;;  %v3632_v39 = vld [vmem:[%s5456_s5 + $0x194] sm:$0xf]  ;;  %v3585_v45 = vld [vmem:[%s5456_s5 + $0x14] sm:$0xf0] }
  0xca   : > { %v2839_v47 = vor.u32 %v3585_v45, %v2838_v44  ;;  %v2918_v44 = vld [vmem:[%s5456_s5 + $0xb0] sm:$0xf]  ;;  %v3605_v45 = vld [vmem:[%s5456_s5 + $0xb4] sm:$0xf0] }
  0xcb   : > { %923 = vmatpush.bf16.msrb.mxu1 %v2723_v52  ;;  %v2872_v52 = vld [vmem:[%s5456_s5 + $0x58] sm:$0xf0] }
  0xcc   : > { %v2875_v53 = vor.u32 %v3592_v50, %v2872_v52  ;;  %v3631_v50 = vld [vmem:[%s5456_s5 + $0x184] sm:$0xf0] }
  0xcd   : > { %1118 = vmatpush.bf16.msrb.mxu2 %v2871_v51  ;;  %902 = vmatpush.bf16.msra.mxu3 %v2799_v59  ;;  %v2843_v51 = vor.u32 %v3584_v46, %v2840_v48  ;;  %v2767_v52 = vor.u32 %v3631_v50, %v2766_v49  ;;  %v3604_v46 = vld [vmem:[%s5456_s5 + $0xb4] sm:$0xf] }
  0xcf   : > { %924 = vmatpush.bf16.msrb.mxu1 %v2715_v1  ;;  %v2863_v1 = vor.u32 %v3591_v63, %v2862_v62  ;;  %v2832_v62 = vld [vmem:[%s5456_s5 + $0x8] sm:$0xf0] }
  0xd0   : > { %v2835_v2 = vor.u32 %v3582_v61, %v2832_v62  ;;  %v2902_v61 = vld [vmem:[%s5456_s5 + $0x90] sm:$0xf]  ;;  %v3601_v62 = vld [vmem:[%s5456_s5 + $0x94] sm:$0xf0] }
  0xd1   : > { %1119 = vmatpush.bf16.msrb.mxu2 %v2863_v1  ;;  %903 = vmatpush.bf16.msra.mxu3 %v2791_v11  ;;  %v2831_v1 = vor.u32 %v3583_v60, %v2830_v55  ;;  %v2952_v11 = vld [vmem:[%s5456_s5 + $0xf8] sm:$0xf0] }
  0xd2   : > { %v2955_v13 = vor.u32 %v3612_v8, %v2952_v11  ;;  %v2894_v8 = vld [vmem:[%s5456_s5 + $0x80] sm:$0xf] }
  0xd3   : > { %925 = vmatpush.bf16.msrb.mxu1 %v2707_v12  ;;  %v702_v12 = vor.u32 %v700_v5, %v4039_v24  ;;  %v3634_v24 = vld [vmem:[%s5456_s5 + $0x1a4] sm:$0xf]  ;;  %v3038_v11 = vld [vmem:[%s5456_s5 + $0x260] sm:$0xf] }
  0xd4   : > { %v2787_v30 = vor.u32 %v3634_v24, %v2784_v29  ;;  %v3608_v24 = vld [vmem:[%s5456_s5 + $0xd4] sm:$0xf] }
  0xd5   : > { %v707_v27 = vsel %vm675_vm4, %v702_v12, %v706_v18  ;;  %1120 = vmatpush.bf16.msrb.mxu2 %v2855_v19  ;;  %v2944_v18 = vld [vmem:[%s5456_s5 + $0xe8] sm:$0xf0] }
  0xd6   : > { %926 = vmatmul.bf16.vlgmr.msrb.gmra.mxu1 %v687_v32  ;;  %893 = vmatmul.bf16.gmra.mxu2 %v707_v27  ;;  %v3587_v32 = vld [vmem:[%s5456_s5 + $0x24] sm:$0xf0]  ;;  %v2947_v20 = vor.u32 %v3610_v16, %v2944_v18  ;;  %v3048_v18 = vld [vmem:[%s5456_s5 + $0x278] sm:$0xf0] }
  0xd7   : > { %1154 = vmatpush.bf16.msra.mxu1 %v2891_v28  ;;  %v2783_v28 = vor.u32 %v3635_v23, %v2782_v22  ;;  %v2847_v34 = vor.u32 %v3587_v32, %v2846_v31  ;;  %942 = vmatpush.bf16.msrb.mxu0 %v2787_v30  ;;  %v3609_v22 = vld [vmem:[%s5456_s5 + $0xd4] sm:$0xf0]  ;;  %v2926_v30 = vld [vmem:[%s5456_s5 + $0xc0] sm:$0xf]  ;;  %v3607_v31 = vld [vmem:[%s5456_s5 + $0xc4] sm:$0xf0] }
  0xd8   : > { %v3606_v32 = vld [vmem:[%s5456_s5 + $0xc4] sm:$0xf]  ;;  %v3599_v16 = vld [vmem:[%s5456_s5 + $0x84] sm:$0xf0] }
  0xd9   : > { %904 = vmatpush.bf16.msra.mxu3 %v2783_v28  ;;  %1121 = vmatpush.bf16.msrb.mxu2 %v2847_v34  ;;  %v2931_v37 = vor.u32 %v3606_v32, %v2928_v33 }
  0xdb   : > { %1155 = vmatpush.bf16.msra.mxu1 %v2883_v41  ;;  %v2776_v41 = vld [vmem:[%s5456_s5 + $0x198] sm:$0xf0] }
  0xdc   : > { %v2779_v43 = vor.u32 %v3632_v39, %v2776_v41 }
  0xdd   : > { %905 = vmatpush.bf16.msra.mxu3 %v2775_v40  ;;  %1122 = vmatpush.bf16.msrb.mxu2 %v2839_v47  ;;  %v2919_v47 = vor.u32 %v3605_v45, %v2918_v44  ;;  %v3676_v44 = vld [vmem:[%s5456_s5 + $0x2f4] sm:$0xf]  ;;  %v3112_v45 = vld [vmem:[%s5456_s5 + $0x2f8] sm:$0xf0] }
  0xde   : > { %943 = vmatpush.bf16.msrb.mxu0 %v2779_v43 }
  0xdf   : > { %1156 = vmatpush.bf16.msra.mxu1 %v2875_v53  ;;  %v3630_v53 = vld [vmem:[%s5456_s5 + $0x184] sm:$0xf] }
  0xe0   : > { %v2771_v59 = vor.u32 %v3630_v53, %v2768_v54  ;;  %v3602_v53 = vld [vmem:[%s5456_s5 + $0xa4] sm:$0xf] }
  0xe1   : > { %906 = vmatpush.bf16.msra.mxu3 %v2767_v52  ;;  %1123 = vmatpush.bf16.msrb.mxu2 %v2831_v1  ;;  %v3603_v52 = vld [vmem:[%s5456_s5 + $0xa4] sm:$0xf0]  ;;  %v2904_v1 = vld [vmem:[%s5456_s5 + $0x98] sm:$0xf0] }
  0xe2   : > { %944 = vmatpush.bf16.msrb.mxu0 %v2771_v59 }
  0xe3   : > { %1157 = vmatpush.bf16.msra.mxu1 %v2867_v6  ;;  %v2950_v6 = vld [vmem:[%s5456_s5 + $0xf0] sm:$0xf] }
  0xe4   : > { %v2951_v10 = vor.u32 %v3613_v7, %v2950_v6 }
  0xe6   : > { %931 = vmatmul.bf16.gmra.mxu1 %v707_v27  ;;  %1135 = vmatpush.bf16.msrb.mxu3 %v2951_v10  ;;  %v2903_v10 = vor.u32 %v3601_v62, %v2902_v61  ;;  %v3656_v61 = vld [vmem:[%s5456_s5 + $0x254] sm:$0xf] }
  0xe7   : > { %1158 = vmatpush.bf16.msra.mxu1 %v2859_v21  ;;  %1173 = vmatpush.bf16.msra.mxu0 %v2955_v13  ;;  %v2934_v21 = vld [vmem:[%s5456_s5 + $0xd0] sm:$0xf] }
  0xe8   : > { %1124 = vmatmul.bf16.vlgmr.msrb.gmra.mxu2 %v4001_v3  ;;  %v2935_v28 = vor.u32 %v3609_v22, %v2934_v21 }
  0xea   : > { %1136 = vmatpush.bf16.msrb.mxu3 %v2943_v17 }
  0xeb   : > { %1159 = vmatpush.bf16.msra.mxu1 %v2851_v36  ;;  %1174 = vmatpush.bf16.msra.mxu0 %v2947_v20  ;;  %v2927_v36 = vor.u32 %v3607_v31, %v2926_v30  ;;  %v2896_v20 = vld [vmem:[%s5456_s5 + $0x88] sm:$0xf0] }
  0xee   : > { %1137 = vmatpush.bf16.msrb.mxu3 %v2935_v28 }
  0xef   : > { %1160 = vmatpush.bf16.msra.mxu1 %v2843_v51  ;;  %v2910_v51 = vld [vmem:[%s5456_s5 + $0xa0] sm:$0xf] }
  0xf0   : > { %v2911_v55 = vor.u32 %v3603_v52, %v2910_v51  ;;  %v3675_v51 = vld [vmem:[%s5456_s5 + $0x2e4] sm:$0xf0]  ;;  %v3022_v52 = vld [vmem:[%s5456_s5 + $0x240] sm:$0xf] }
  0xf2   : > { %1138 = vmatpush.bf16.msrb.mxu3 %v2927_v36 }
  0xf3   : > { %1161 = vmatpush.bf16.msra.mxu1 %v2835_v2  ;;  %v3661_v2 = vld [vmem:[%s5456_s5 + $0x274] sm:$0xf0] }
  0xf6   : > { %1162 = vmatmul.bf16.vlgmr.msra.gmra.mxu1 %v4001_v3  ;;  %1139 = vmatpush.bf16.msrb.mxu3 %v2919_v47  ;;  %v3115_v47 = vor.u32 %v3676_v44, %v3112_v45  ;;  %v3650_v45 = vld [vmem:[%s5456_s5 + $0x224] sm:$0xf] }
  0xf8   : > { %1129 = vmatmul.bf16.gmra.mxu2 %v4016_v9 }
  0xfa   : > { %1140 = vmatpush.bf16.msrb.mxu3 %v2911_v55 }
  0xfe   : > { %1141 = vmatpush.bf16.msrb.mxu3 %v2903_v10  ;;  %v3096_v10 = vld [vmem:[%s5456_s5 + $0x2d8] sm:$0xf0] }
 0x106   : > { %1167 = vmatmul.bf16.gmra.mxu1 %v4016_v9 }
 0x133   : > { %v529_v26 = vpop.f32.mrf.mxu1 }
 0x134   : > { %v530_v42 = vadd.f32 %v4165_v25, %v529_v26  ;;  %v2936_v26 = vld [vmem:[%s5456_s5 + $0xd8] sm:$0xf0] }
 0x135   : > { %v2939_v29 = vor.u32 %v3608_v24, %v2936_v26  ;;  %v2895_v26 = vor.u32 %v3599_v16, %v2894_v8  ;;  %v3006_v16 = vld [vmem:[%s5456_s5 + $0x220] sm:$0xf] }
 0x136   : > { %v543_v63 = vpack.c.bf16 %v530_v42, %v530_v42 }
 0x137   : > { %1175 = vmatpush.bf16.msra.mxu0 %v2939_v29  ;;  %1142 = vmatpush.bf16.msrb.mxu3 %v2895_v26 }
 0x138   : > { %v561_v57 = vunpack.c.l.b16 %v543_v63  ;;  %v3046_v63 = vld [vmem:[%s5456_s5 + $0x270] sm:$0xf] }
 0x139   : > { %v3047_v7 = vor.u32 %v3661_v2, %v3046_v63  ;;  %v3032_v63 = vld [vmem:[%s5456_s5 + $0x258] sm:$0xf0] }
 0x13a   : > { %v3035_v2 = vor.u32 %v3656_v61, %v3032_v63  ;;  %v1230_v61 = vrot.slane %v4001_v3, 1  ;;  %v3062_v63 = vld [vmem:[%s5456_s5 + $0x290] sm:$0xf] }
 0x13b   : > { %v531_v56 = vpop.f32.mrf.mxu1  ;;  %1176 = vmatpush.bf16.msra.mxu0 %v2931_v37  ;;  %1404 = vmatpush.bf16.msra.mxu2 %v3047_v7  ;;  %v3672_v7 = vld [vmem:[%s5456_s5 + $0x2d4] sm:$0xf] }
 0x13c   : > { %v532_v0 = vadd.f32 %v4165_v25, %v531_v56  ;;  %v2912_v56 = vld [vmem:[%s5456_s5 + $0xa8] sm:$0xf0] }
 0x13d   : > { %v2915_v60 = vor.u32 %v3602_v53, %v2912_v56  ;;  %v3655_v53 = vld [vmem:[%s5456_s5 + $0x244] sm:$0xf0] }
 0x13e   : > { %v544_v5 = vpack.c.bf16 %v532_v0, %v532_v0  ;;  %v3600_v0 = vld [vmem:[%s5456_s5 + $0x94] sm:$0xf]  ;;  %v3023_v56 = vor.u32 %v3655_v53, %v3022_v52  ;;  %v3666_v53 = vld [vmem:[%s5456_s5 + $0x2a4] sm:$0xf] }
 0x13f   : > { %v2907_v15 = vor.u32 %v3600_v0, %v2904_v1  ;;  %v3094_v0 = vld [vmem:[%s5456_s5 + $0x2d0] sm:$0xf]  ;;  %v3673_v1 = vld [vmem:[%s5456_s5 + $0x2d4] sm:$0xf0] }
 0x140   : > { %v562_v12 = vunpack.c.l.b16 %v544_v5  ;;  %v3095_v8 = vor.u32 %v3673_v1, %v3094_v0  ;;  %v3665_v1 = vld [vmem:[%s5456_s5 + $0x294] sm:$0xf0] }
 0x141   : > { %v3063_v3 = vor.u32 %v3665_v1, %v3062_v63  ;;  %v3740_v1 = vld [vmem:[%s5459_s8 + $0x1f4] sm:$0xf] }
 0x142   : > { %v565_v19 = vpack.c.b16 %v562_v12, %v561_v57  ;;  %v3659_v57 = vld [vmem:[%s5456_s5 + $0x264] sm:$0xf0]  ;;  %v3660_v12 = vld [vmem:[%s5456_s5 + $0x274] sm:$0xf] }
 0x143   : > { %v534_v23 = vpop.f32.mrf.mxu1  ;;  %v3039_v17 = vor.u32 %v3659_v57, %v3038_v11  ;;  %v3051_v21 = vor.u32 %v3660_v12, %v3048_v18  ;;  %v3654_v11 = vld [vmem:[%s5456_s5 + $0x244] sm:$0xf]  ;;  %v3024_v57 = vld [vmem:[%s5456_s5 + $0x248] sm:$0xf0]  ;;  %v3651_v18 = vld [vmem:[%s5456_s5 + $0x224] sm:$0xf0] }
 0x144   : > { %v576_v27 = vshrl.u32 %v565_v19, 16  ;;  %v535_v34 = vadd.f32 %v4165_v25, %v534_v23  ;;  %v579_v38 = vshll.u32 %v565_v19, 16  ;;  %v3598_v19 = vld [vmem:[%s5456_s5 + $0x84] sm:$0xf] }
 0x145   : > { %1442 = vmatpush.bf16.msrb.mxu1 %v3051_v21  ;;  %v2899_v29 = vor.u32 %v3598_v19, %v2896_v20  ;;  %1405 = vmatpush.bf16.msra.mxu2 %v3039_v17  ;;  %v3027_v17 = vor.u32 %v3654_v11, %v3024_v57  ;;  %v3670_v19 = vld [vmem:[%s5456_s5 + $0x2c4] sm:$0xf]  ;;  %v3088_v20 = vld [vmem:[%s5456_s5 + $0x2c8] sm:$0xf0]  ;;  %v3652_v21 = vld [vmem:[%s5456_s5 + $0x234] sm:$0xf] }
 0x146   : > { %v4284_v35 = vrot.slane %v576_v27, 7  ;;  %v545_v40 = vpack.c.bf16 %v535_v34, %v535_v34  ;;  %v3663_v11 = vld [vmem:[%s5456_s5 + $0x284] sm:$0xf0] }
 0x148   : > { %v581_v42 = vor.u32 %v579_v38, %v4284_v35  ;;  %v563_v48 = vunpack.c.l.b16 %v545_v40  ;;  %v3110_v38 = vld [vmem:[%s5456_s5 + $0x2f0] sm:$0xf] }
 0x149   : > { %v3030_v40 = vld [vmem:[%s5456_s5 + $0x250] sm:$0xf] }
 0x14a   : > { %v4311_v54 = vsel %vm3985_vm3, 0, %v581_v42 }
 0x14b   : > { %v536_v39 = vpop.f32.mrf.mxu1  ;;  %v691_v6 = vshll.u32 %v4311_v54, 16  ;;  %v689_v28 = vshrl.u32 %v4311_v54, 16  ;;  %v1233_v31 = vrot.slane %v4311_v54, 1 }
 0x14c   : > { %v537_v41 = vadd.f32 %v4165_v25, %v536_v39  ;;  %v2920_v25 = vld [vmem:[%s5456_s5 + $0xb8] sm:$0xf0]  ;;  %v3677_v39 = vld [vmem:[%s5456_s5 + $0x2f4] sm:$0xf0] }
 0x14d   : > { %v2923_v50 = vor.u32 %v3604_v46, %v2920_v25  ;;  %v693_v24 = vrot.slane %v691_v6, 1  ;;  %v3111_v42 = vor.u32 %v3677_v39, %v3110_v38  ;;  %v3658_v25 = vld [vmem:[%s5456_s5 + $0x264] sm:$0xf]  ;;  %v3653_v6 = vld [vmem:[%s5456_s5 + $0x234] sm:$0xf0] }
 0x14e   : > { %v546_v43 = vpack.c.bf16 %v537_v41, %v537_v41  ;;  %v2998_v38 = vld [vmem:[%s5456_s5 + $0x210] sm:$0xf] }
 0x14f   : > { %1177 = vmatpush.bf16.msra.mxu0 %v2923_v50  ;;  %v694_v34 = vor.u32 %v693_v24, %v689_v28 }
 0x150   : > { %v564_v49 = vunpack.c.l.b16 %v546_v43  ;;  %v3657_v43 = vld [vmem:[%s5456_s5 + $0x254] sm:$0xf0] }
 0x151   : > { %v3031_v46 = vor.u32 %v3657_v43, %v3030_v40  ;;  %v3649_v40 = vld [vmem:[%s5456_s5 + $0x214] sm:$0xf0] }
 0x152   : > { %v566_v59 = vpack.c.b16 %v564_v49, %v563_v48  ;;  %v3040_v48 = vld [vmem:[%s5456_s5 + $0x268] sm:$0xf0]  ;;  %v3102_v49 = vld [vmem:[%s5456_s5 + $0x2e0] sm:$0xf]  ;;  %v2999_v43 = vor.u32 %v3649_v40, %v2998_v38 }
 0x153   : > { %1178 = vmatpush.bf16.msra.mxu0 %v2915_v60  ;;  %v3043_v50 = vor.u32 %v3658_v25, %v3040_v48  ;;  %1406 = vmatpush.bf16.msra.mxu2 %v3031_v46  ;;  %v3103_v55 = vor.u32 %v3675_v51, %v3102_v49  ;;  %v3104_v60 = vld [vmem:[%s5456_s5 + $0x2e8] sm:$0xf0]  ;;  %v3667_v48 = vld [vmem:[%s5456_s5 + $0x2a4] sm:$0xf0]  ;;  %v2990_v49 = vld [vmem:[%s5456_s5 + $0x200] sm:$0xf] }
 0x154   : > { %v591_v5 = vshrl.u32 %v566_v59, 16  ;;  %v594_v14 = vshll.u32 %v566_v59, 16  ;;  %v3674_v59 = vld [vmem:[%s5456_s5 + $0x2e4] sm:$0xf]  ;;  %v3008_v46 = vld [vmem:[%s5456_s5 + $0x228] sm:$0xf0] }
 0x155   : > { %1443 = vmatpush.bf16.msrb.mxu1 %v3043_v50  ;;  %v3107_v62 = vor.u32 %v3674_v59, %v3104_v60  ;;  %v3011_v25 = vor.u32 %v3650_v45, %v3008_v46  ;;  %v3647_v50 = vld [vmem:[%s5456_s5 + $0x204] sm:$0xf0]  ;;  %v3000_v60 = vld [vmem:[%s5456_s5 + $0x218] sm:$0xf0] }
 0x156   : > { %v593_v13 = vrot.slane %v591_v5, 7  ;;  %v3014_v5 = vld [vmem:[%s5456_s5 + $0x230] sm:$0xf]  ;;  %v2991_v52 = vor.u32 %v3647_v50, %v2990_v49 }
 0x157   : > { %1179 = vmatpush.bf16.msra.mxu0 %v2907_v15  ;;  %1407 = vmatpush.bf16.msra.mxu2 %v3023_v56  ;;  %v3015_v12 = vor.u32 %v3653_v6, %v3014_v5  ;;  %v3671_v15 = vld [vmem:[%s5456_s5 + $0x2c4] sm:$0xf0]  ;;  %v3648_v56 = vld [vmem:[%s5456_s5 + $0x214] sm:$0xf]  ;;  %v3064_v5 = vld [vmem:[%s5456_s5 + $0x298] sm:$0xf0] }
 0x158   : > { %v596_v22 = vor.u32 %v594_v14, %v593_v13  ;;  %v4363_v23 = vsel %vm3985_vm3, %v593_v13, 0  ;;  %v3099_v13 = vor.u32 %v3672_v7, %v3096_v10  ;;  %v3086_v14 = vld [vmem:[%s5456_s5 + $0x2c0] sm:$0xf]  ;;  %v3003_v0 = vor.u32 %v3648_v56, %v3000_v60  ;;  %v2992_v6 = vld [vmem:[%s5456_s5 + $0x208] sm:$0xf0] }
 0x159   : > { %v1238_v33 = vrot.slane %v4363_v23, 1  ;;  %1444 = vmatpush.bf16.msrb.mxu1 %v3035_v2  ;;  %v712_v26 = vshll.u32 %v4363_v23, 16  ;;  %v3087_v28 = vor.u32 %v3671_v15, %v3086_v14  ;;  %v3669_v23 = vld [vmem:[%s5456_s5 + $0x2b4] sm:$0xf0]  ;;  %v3664_v2 = vld [vmem:[%s5456_s5 + $0x294] sm:$0xf] }
 0x15a   : > { %v4367_v27 = vsel %vm567_vm1, %v4284_v35, %v596_v22  ;;  %v3016_v22 = vld [vmem:[%s5456_s5 + $0x238] sm:$0xf0]  ;;  %v3054_v10 = vld [vmem:[%s5456_s5 + $0x280] sm:$0xf]  ;;  %v3270_v56 = vld [vmem:[%s5459_s8 + $0x1f0] sm:$0xf] }
 0x15b   : > { %v696_v30 = vshll.u32 %v4367_v27, 16  ;;  %v1234_v32 = vrot.slane %v4367_v27, 1  ;;  %1180 = vmatpush.bf16.msra.mxu0 %v2899_v29  ;;  %v708_v24 = vshrl.u32 %v4367_v27, 16  ;;  %1408 = vmatpush.bf16.msra.mxu2 %v3015_v12  ;;  %v3007_v29 = vor.u32 %v3651_v18, %v3006_v16  ;;  %v3662_v12 = vld [vmem:[%s5456_s5 + $0x284] sm:$0xf]  ;;  %v927_v18 = vpop.f32.mrf.mxu1 }
 0x15c   : > { %v3055_v14 = vor.u32 %v3663_v11, %v3054_v10  ;;  %v1236_v16 = vrot.slane %v4124_v4, 1  ;;  %v3741_v60 = vld [vmem:[%s5459_s8 + $0x1f4] sm:$0xf0]  ;;  %v3723_v10 = vld [vmem:[%s5459_s8 + $0x164] sm:$0xf0] }
 0x15d   : > { %v4374_v36 = vrot.slane %v696_v30, 1  ;;  %v4377_v35 = vsel %vm1229_vm5, %v1233_v31, %v1234_v32  ;;  %v4380_v37 = vsel %vm1229_vm5, %v1234_v32, %v1238_v33  ;;  %v3091_v30 = vor.u32 %v3670_v19, %v3088_v20  ;;  %1445 = vmatpush.bf16.msrb.mxu1 %v3027_v17  ;;  %v3262_v11 = vld [vmem:[%s5459_s8 + $0x1e0] sm:$0xf] }
 0x15e   : > { %v3019_v32 = vor.u32 %v3652_v21, %v3016_v22  ;;  %v714_v33 = vrot.slane %v712_v26, 1  ;;  %v3271_v63 = vor.u32 %v3741_v60, %v3270_v56  ;;  %v3192_v56 = vld [vmem:[%s5459_s8 + $0x158] sm:$0xf0] }
 0x15f   : > { %v699_v41 = vsel %vm675_vm4, %v694_v34, %v4374_v36  ;;  %v710_v31 = vor.u32 %v708_v24, %v4374_v36  ;;  %1409 = vmatpush.bf16.msra.mxu2 %v3007_v29  ;;  %v3078_v34 = vld [vmem:[%s5456_s5 + $0x2b0] sm:$0xf] }
 0x160   : > { %907 = vmatmul.bf16.vlgmr.msra.gmra.mxu3 %v699_v41  ;;  %945 = vmatmul.bf16.vlgmr.msrb.gmra.mxu0 %v699_v41  ;;  %v3079_v39 = vor.u32 %v3669_v23, %v3078_v34  ;;  %v3668_v41 = vld [vmem:[%s5456_s5 + $0x2b4] sm:$0xf] }
 0x161   : > { %1423 = vmatpush.bf16.msra.mxu3 %v3111_v42  ;;  %1461 = vmatpush.bf16.msrb.mxu0 %v3115_v47  ;;  %v715_v36 = vsel %vm675_vm4, %v710_v31, %v714_v33  ;;  %v3080_v42 = vld [vmem:[%s5456_s5 + $0x2b8] sm:$0xf0]  ;;  %v3070_v47 = vld [vmem:[%s5456_s5 + $0x2a0] sm:$0xf] }
 0x162   : > { %1446 = vmatpush.bf16.msrb.mxu1 %v3019_v32  ;;  %v3083_v44 = vor.u32 %v3668_v41, %v3080_v42  ;;  %v3071_v51 = vor.u32 %v3667_v48, %v3070_v47 }
 0x163   : > { %1410 = vmatpush.bf16.msra.mxu2 %v2999_v43  ;;  %v929_v19 = vpop.f32.mrf.mxu1 }
 0x165   : > { %1424 = vmatpush.bf16.msra.mxu3 %v3103_v55  ;;  %1462 = vmatpush.bf16.msrb.mxu0 %v3107_v62  ;;  %v3072_v55 = vld [vmem:[%s5456_s5 + $0x2a8] sm:$0xf0]  ;;  %v1231_v62 = vrot.slane %v4016_v9, 1  ;;  %v3646_v9 = vld [vmem:[%s5456_s5 + $0x204] sm:$0xf] }
 0x166   : > { %1447 = vmatpush.bf16.msrb.mxu1 %v3011_v25  ;;  %v3075_v59 = vor.u32 %v3666_v53, %v3072_v55  ;;  %v2995_v57 = vor.u32 %v3646_v9, %v2992_v6  ;;  %v3206_v53 = vld [vmem:[%s5459_s8 + $0x170] sm:$0xf]  ;;  %v3725_v55 = vld [vmem:[%s5459_s8 + $0x174] sm:$0xf0]  ;;  %v1488_v9 = vld [vmem:[%s5457_s6] sm:$0x3] }
 0x167   : > { %1411 = vmatpush.bf16.msra.mxu2 %v2991_v52  ;;  %v1232_v7 = vsel %vm1229_vm5, %v1230_v61, %v1231_v62  ;;  %v1237_v17 = vsel %vm1229_vm5, %v1231_v62, %v1236_v16  ;;  %v3724_v61 = vld [vmem:[%s5459_s8 + $0x174] sm:$0xf]  ;;  %v3208_v62 = vld [vmem:[%s5459_s8 + $0x178] sm:$0xf0]  ;;  %v4653_v6 = vld [vmem:[%s5458_s7] sm:$0x3] }
 0x168   : > { %v3722_v16 = vld [vmem:[%s5459_s8 + $0x164] sm:$0xf] }
 0x169   : > { %1425 = vmatpush.bf16.msra.mxu3 %v3095_v8  ;;  %1463 = vmatpush.bf16.msrb.mxu0 %v3099_v13  ;;  %v3067_v8 = vor.u32 %v3664_v2, %v3064_v5  ;;  %v3056_v13 = vld [vmem:[%s5456_s5 + $0x288] sm:$0xf0]  ;;  %v3272_v2 = vld [vmem:[%s5459_s8 + $0x1f8] sm:$0xf0] }
 0x16a   : > { %1448 = vmatpush.bf16.msrb.mxu1 %v3003_v0  ;;  %1412 = vmatmul.bf16.vlgmr.msra.gmra.mxu2 %v1232_v7  ;;  %v3059_v15 = vor.u32 %v3662_v12, %v3056_v13  ;;  %v3211_v0 = vor.u32 %v3724_v61, %v3208_v62 }
 0x16b   : > { %v932_v20 = vpop.f32.mrf.mxu1 }
 0x16d   : > { %1426 = vmatpush.bf16.msra.mxu3 %v3087_v28  ;;  %1464 = vmatpush.bf16.msrb.mxu0 %v3091_v30 }
 0x16e   : > { %1449 = vmatpush.bf16.msrb.mxu1 %v2995_v57 }
 0x170   : > { %912 = vmatmul.bf16.gmra.mxu3 %v715_v36  ;;  %950 = vmatmul.bf16.gmra.mxu0 %v715_v36 }
 0x171   : > { %1427 = vmatpush.bf16.msra.mxu3 %v3079_v39  ;;  %1465 = vmatpush.bf16.msrb.mxu0 %v3083_v44 }
 0x172   : > { %1450 = vmatmul.bf16.vlgmr.msrb.gmra.mxu1 %v1232_v7  ;;  %v3275_v7 = vor.u32 %v3740_v1, %v3272_v2 }
 0x173   : > { %1907 = vmatpush.bf16.msra.mxu1 %v3211_v0  ;;  %v3256_v0 = vld [vmem:[%s5459_s8 + $0x1d8] sm:$0xf0] }
 0x175   : > { %1428 = vmatpush.bf16.msra.mxu3 %v3071_v51  ;;  %1466 = vmatpush.bf16.msrb.mxu0 %v3075_v59  ;;  %v3207_v59 = vor.u32 %v3725_v55, %v3206_v53  ;;  %v3737_v53 = vld [vmem:[%s5459_s8 + $0x1d4] sm:$0xf0]  ;;  %v3720_v55 = vld [vmem:[%s5459_s8 + $0x154] sm:$0xf] }
 0x176   : > { %v3195_v62 = vor.u32 %v3720_v55, %v3192_v56  ;;  %v3176_v55 = vld [vmem:[%s5459_s8 + $0x138] sm:$0xf0]  ;;  %v3732_v56 = vld [vmem:[%s5459_s8 + $0x1b4] sm:$0xf] }
 0x177   : > { %1869 = vmatpush.bf16.msrb.mxu2 %v3207_v59 }
 0x179   : > { %1429 = vmatpush.bf16.msra.mxu3 %v3063_v3  ;;  %1467 = vmatpush.bf16.msrb.mxu0 %v3067_v8  ;;  %v3198_v8 = vld [vmem:[%s5459_s8 + $0x160] sm:$0xf] }
 0x17a   : > { %1417 = vmatmul.bf16.gmra.mxu2 %v1237_v17 }
 0x17d   : > { %1430 = vmatpush.bf16.msra.mxu3 %v3055_v14  ;;  %1468 = vmatpush.bf16.msrb.mxu0 %v3059_v15  ;;  %v3199_v14 = vor.u32 %v3723_v10, %v3198_v8  ;;  %v3739_v15 = vld [vmem:[%s5459_s8 + $0x1e4] sm:$0xf0] }
 0x17f   : > { %1870 = vmatpush.bf16.msrb.mxu2 %v3199_v14  ;;  %v4739_v14 = vperm.slane %v4653_v6, 0 }
 0x180   : > { %1143 = vmatmul.bf16.vlgmr.msrb.gmra.mxu3 %v4311_v54  ;;  %1181 = vmatmul.bf16.vlgmr.msra.gmra.mxu0 %v4311_v54  ;;  %v889_v54 = vpop.f32.mrf.mxu2 }
 0x181   : > { %1888 = vmatpush.bf16.msrb.mxu3 %v3271_v63  ;;  %1926 = vmatpush.bf16.msra.mxu0 %v3275_v7  ;;  %v3736_v63 = vld [vmem:[%s5459_s8 + $0x1d4] sm:$0xf] }
 0x182   : > { %1455 = vmatmul.bf16.gmra.mxu1 %v1237_v17  ;;  %v3200_v17 = vld [vmem:[%s5459_s8 + $0x168] sm:$0xf0] }
 0x188   : > { %v4575_v4 = vpop.f32.mrf.mxu2 }
 0x190   : > { %1148 = vmatmul.bf16.gmra.mxu3 %v4367_v27  ;;  %1186 = vmatmul.bf16.gmra.mxu0 %v4367_v27  ;;  %v894_v24 = vpop.f32.mrf.mxu2 }
 0x1a0   : > { %1431 = vmatmul.bf16.vlgmr.msra.gmra.mxu3 %v4377_v35  ;;  %1469 = vmatmul.bf16.vlgmr.msrb.gmra.mxu0 %v4377_v35  ;;  %v4581_v35 = vpop.f32.mrf.mxu1 }
 0x1a8   : > { %v1163_v33 = vpop.f32.mrf.mxu1 }
 0x1b0   : > { %1436 = vmatmul.bf16.gmra.mxu3 %v4380_v37  ;;  %1474 = vmatmul.bf16.gmra.mxu0 %v4380_v37  ;;  %v4585_v37 = vpop.f32.mrf.mxu2  ;;  %v4595_v39 = vpop.f32.mrf.mxu1 }
 0x1b8   : > { %v4593_v36 = vpop.f32.mrf.mxu2  ;;  %v4603_v44 = vpop.f32.mrf.mxu1 }
 0x1c0   : > { %v4599_v42 = vpop.f32.mrf.mxu2  ;;  %v4613_v48 = vpop.f32.mrf.mxu1 }
 0x1c8   : > { %v4607_v46 = vpop.f32.mrf.mxu2 }
 0x1d0   : > { %v4617_v50 = vpop.f32.mrf.mxu2 }
 0x1dd   : > { %v946_v21 = vpop.f32.mrf.mxu0 }
 0x1de   : > { %v947_v22 = vadd.f32 %v946_v21, %v927_v18  ;;  %v3738_v21 = vld [vmem:[%s5459_s8 + $0x1e4] sm:$0xf] }
 0x1e0   : > { %v1164_v5 = vadd.f32 %v1163_v33, %v947_v22  ;;  %v3264_v22 = vld [vmem:[%s5459_s8 + $0x1e8] sm:$0xf0]  ;;  %v3721_v33 = vld [vmem:[%s5459_s8 + $0x154] sm:$0xf0] }
 0x1e3   : > { %v908_v26 = vpop.f32.mrf.mxu3 }
 0x1e4   : > { %v4577_v28 = vadd.f32 %v908_v26, %v889_v54  ;;  %v4673_v54 = vperm.slane %v1488_v9, 1  ;;  %v3267_v26 = vor.u32 %v3738_v21, %v3264_v22  ;;  %v3248_v21 = vld [vmem:[%s5459_s8 + $0x1c8] sm:$0xf0] }
 0x1e5   : > { %v948_v27 = vpop.f32.mrf.mxu0 }
 0x1e6   : > { %v4579_v29 = vadd.f32 %v948_v27, %v929_v19  ;;  %v3263_v19 = vor.u32 %v3739_v15, %v3262_v11  ;;  %1927 = vmatpush.bf16.msra.mxu0 %v3267_v26  ;;  %v1126_v59 = vadd.f32 %v4593_v36, %v4577_v28  ;;  %v4715_v28 = vperm.slane %v1488_v9, 0  ;;  %v3182_v11 = vld [vmem:[%s5459_s8 + $0x140] sm:$0xf]  ;;  %v3718_v9 = vld [vmem:[%s5459_s8 + $0x144] sm:$0xf] }
 0x1e7   : > { %v3259_v36 = vor.u32 %v3736_v63, %v3256_v0 }
 0x1e8   : > { %1889 = vmatpush.bf16.msrb.mxu3 %v3263_v19  ;;  %v1166_v1 = vadd.f32 %v4595_v39, %v4579_v29  ;;  %v3246_v29 = vld [vmem:[%s5459_s8 + $0x1c0] sm:$0xf] }
 0x1ea   : > { %1928 = vmatpush.bf16.msra.mxu0 %v3259_v36 }
 0x1eb   : > { %v4583_v30 = vpop.f32.mrf.mxu3 }
 0x1ec   : > { %v911_v2 = vadd.f32 %v4583_v30, %v4575_v4  ;;  %v3719_v4 = vld [vmem:[%s5459_s8 + $0x144] sm:$0xf0] }
 0x1ed   : > { %v951_v31 = vpop.f32.mrf.mxu0  ;;  %v1413_v12 = vpop.f32.mrf.mxu2  ;;  %v3183_v39 = vor.u32 %v3719_v4, %v3182_v11  ;;  %v3731_v11 = vld [vmem:[%s5459_s8 + $0x1a4] sm:$0xf0] }
 0x1ee   : > { %v4587_v32 = vadd.f32 %v951_v31, %v932_v20  ;;  %v3203_v20 = vor.u32 %v3722_v16, %v3200_v17  ;;  %v3190_v31 = vld [vmem:[%s5459_s8 + $0x150] sm:$0xf]  ;;  %v3734_v16 = vld [vmem:[%s5459_s8 + $0x1c4] sm:$0xf] }
 0x1ef   : > { %v1451_v52 = vpop.f32.mrf.mxu1  ;;  %v3251_v26 = vor.u32 %v3734_v16, %v3248_v21 }
 0x1f0   : > { %1908 = vmatpush.bf16.msra.mxu1 %v3203_v20 }
 0x1f1   : > { %1929 = vmatpush.bf16.msra.mxu0 %v3251_v26  ;;  %v3712_v26 = vld [vmem:[%s5459_s8 + $0x114] sm:$0xf] }
 0x1f3   : > { %v913_v34 = vpop.f32.mrf.mxu3 }
 0x1f4   : > { %v4589_v23 = vadd.f32 %v913_v34, %v894_v24  ;;  %v4682_v24 = vperm.slane %v4653_v6, 1  ;;  %v3254_v34 = vld [vmem:[%s5459_s8 + $0x1d0] sm:$0xf]  ;;  %1909 = vmatpush.bf16.msra.mxu1 %v3195_v62 }
 0x1f5   : > { %v4591_v38 = vpop.f32.mrf.mxu0  ;;  %v3255_v61 = vor.u32 %v3737_v53, %v3254_v34  ;;  %v1169_v34 = vadd.f32 %v4603_v44, %v4587_v32  ;;  %v3716_v53 = vld [vmem:[%s5459_s8 + $0x134] sm:$0xf] }
 0x1f7   : > { %1890 = vmatpush.bf16.msrb.mxu3 %v3255_v61 }
 0x1fb   : > { %v4597_v40 = vpop.f32.mrf.mxu3 }
 0x1fc   : > { %v916_v61 = vadd.f32 %v4597_v40, %v4585_v37 }
 0x1fd   : > { %v1182_v41 = vpop.f32.mrf.mxu0 }
 0x1fe   : > { %v1183_v57 = vadd.f32 %v1182_v41, %v1164_v5  ;;  %v1453_v41 = vpop.f32.mrf.mxu1 }
 0x203   : > { %v4601_v43 = vpop.f32.mrf.mxu3 }
 0x204   : > { %v1145_v7 = vadd.f32 %v4601_v43, %v1126_v59  ;;  %v3735_v43 = vld [vmem:[%s5459_s8 + $0x1c4] sm:$0xf0]  ;;  %v3240_v59 = vld [vmem:[%s5459_s8 + $0x1b8] sm:$0xf0] }
 0x205   : > { %v4605_v45 = vpop.f32.mrf.mxu0  ;;  %v3247_v19 = vor.u32 %v3735_v43, %v3246_v29 }
 0x206   : > { %v1456_v0 = vpop.f32.mrf.mxu1 }
 0x207   : > { %1891 = vmatpush.bf16.msrb.mxu3 %v3247_v19  ;;  %v3713_v19 = vld [vmem:[%s5459_s8 + $0x114] sm:$0xf0] }
 0x20b   : > { %v4609_v47 = vpop.f32.mrf.mxu3 }
 0x20d   : > { %v4611_v25 = vpop.f32.mrf.mxu0 }
 0x213   : > { %v4615_v49 = vpop.f32.mrf.mxu3 }
 0x215   : > { %v4619_v51 = vpop.f32.mrf.mxu0 }
 0x21b   : > { %v4645_v3 = vpop.f32.mrf.mxu3 }
 0x21d   : > { %v1470_v13 = vpop.f32.mrf.mxu0 }
 0x21e   : > { %v1471_v18 = vadd.f32 %v1470_v13, %v1451_v52  ;;  %v3191_v52 = vor.u32 %v3721_v33, %v3190_v31  ;;  %v3717_v31 = vld [vmem:[%s5459_s8 + $0x134] sm:$0xf0]  ;;  %v3238_v33 = vld [vmem:[%s5459_s8 + $0x1b0] sm:$0xf] }
 0x220   : > { %v1481_v27 = vadd.f32 %v1471_v18, %v1183_v57  ;;  %1871 = vmatpush.bf16.msrb.mxu2 %v3191_v52  ;;  %v3184_v57 = vld [vmem:[%s5459_s8 + $0x148] sm:$0xf0]  ;;  %v1415_v18 = vpop.f32.mrf.mxu2  ;;  %v3733_v52 = vld [vmem:[%s5459_s8 + $0x1b4] sm:$0xf0] }
 0x221   : > { %v3187_v20 = vor.u32 %v3718_v9, %v3184_v57  ;;  %v3168_v9 = vld [vmem:[%s5459_s8 + $0x128] sm:$0xf0]  ;;  %v3730_v57 = vld [vmem:[%s5459_s8 + $0x1a4] sm:$0xf] }
 0x222   : > { %v1496_v60 = vmul.f32 %v4673_v54, %v1481_v27  ;;  %v3174_v27 = vld [vmem:[%s5459_s8 + $0x130] sm:$0xf] }
 0x223   : > { %v1432_v5 = vpop.f32.mrf.mxu3  ;;  %1910 = vmatpush.bf16.msra.mxu1 %v3187_v20  ;;  %v3222_v20 = vld [vmem:[%s5459_s8 + $0x190] sm:$0xf] }
 0x224   : > { %v1509_v8 = vadd.f32 %v4682_v24, %v1496_v60  ;;  %v1433_v10 = vadd.f32 %v1432_v5, %v1413_v12  ;;  %v1185_v12 = vadd.f32 %v4605_v45, %v1166_v1  ;;  %1872 = vmatpush.bf16.msrb.mxu2 %v3183_v39  ;;  %v1128_v45 = vadd.f32 %v4599_v42, %v911_v2 }
 0x225   : > { %v1472_v30 = vpop.f32.mrf.mxu0  ;;  %v954_v42 = vadd.f32 %v4591_v38, %v4581_v35  ;;  %v3239_v35 = vor.u32 %v3733_v52, %v3238_v33  ;;  %v3179_v38 = vor.u32 %v3716_v53, %v3176_v55  ;;  %v1131_v60 = vadd.f32 %v4607_v46, %v4589_v23 }
 0x226   : > { %v1480_v13 = vadd.f32 %v1433_v10, %v1145_v7  ;;  %v1473_v15 = vadd.f32 %v1472_v30, %v1453_v41  ;;  %vm1517_vm6 = vcmp.ge.f32.partialorder %v1509_v8, 0.0  ;;  %v1525_v17 = vmul.f32 0.01, %v1509_v8  ;;  %v3166_v7 = vld [vmem:[%s5459_s8 + $0x120] sm:$0xf] }
 0x227   : > { %v3175_v41 = vor.u32 %v3717_v31, %v3174_v27  ;;  %v1147_v62 = vadd.f32 %v4609_v47, %v1128_v45  ;;  %v3243_v1 = vor.u32 %v3732_v56, %v3240_v59  ;;  %v1171_v23 = vadd.f32 %v4613_v48, %v954_v42  ;;  %1892 = vmatpush.bf16.msrb.mxu3 %v3239_v35  ;;  %v3715_v47 = vld [vmem:[%s5459_s8 + $0x124] sm:$0xf0]  ;;  %v3230_v10 = vld [vmem:[%s5459_s8 + $0x1a0] sm:$0xf]  ;;  %v3160_v27 = vld [vmem:[%s5459_s8 + $0x118] sm:$0xf0] }
 0x228   : > { %v1495_v6 = vmul.f32 %v4715_v28, %v1480_v13  ;;  %v1483_v22 = vadd.f32 %v1473_v15, %v1185_v12  ;;  %v1188_v46 = vadd.f32 %v4611_v25, %v1169_v34  ;;  %v1533_v37 = vsel %vm1517_vm6, %v1509_v8, %v1525_v17  ;;  %1911 = vmatpush.bf16.msra.mxu1 %v3179_v38  ;;  %v3714_v8 = vld [vmem:[%s5459_s8 + $0x124] sm:$0xf]  ;;  %v3232_v12 = vld [vmem:[%s5459_s8 + $0x1a8] sm:$0xf0]  ;;  %v1418_v45 = vpop.f32.mrf.mxu2  ;;  %v3728_v34 = vld [vmem:[%s5459_s8 + $0x194] sm:$0xf] }
 0x229   : > { %1873 = vmatpush.bf16.msrb.mxu2 %v3175_v41  ;;  %1930 = vmatpush.bf16.msra.mxu0 %v3243_v1  ;;  %v3167_v39 = vor.u32 %v3715_v47, %v3166_v7  ;;  %v3231_v43 = vor.u32 %v3731_v11, %v3230_v10  ;;  %v1133_v13 = vadd.f32 %v4617_v50, %v916_v61  ;;  %v3224_v42 = vld [vmem:[%s5459_s8 + $0x198] sm:$0xf0]  ;;  %v3150_v41 = vld [vmem:[%s5459_s8 + $0x100] sm:$0xf]  ;;  %v3711_v35 = vld [vmem:[%s5459_s8 + $0x104] sm:$0xf0] }
 0x22a   : > { %v1508_v32 = vadd.f32 %v4739_v14, %v1495_v6  ;;  %v1498_v44 = vmul.f32 %v4673_v54, %v1483_v22  ;;  %v3171_v16 = vor.u32 %v3714_v8, %v3168_v9  ;;  %v3235_v17 = vor.u32 %v3730_v57, %v3232_v12  ;;  %v3729_v22 = vld [vmem:[%s5459_s8 + $0x194] sm:$0xf0]  ;;  %v3214_v38 = vld [vmem:[%s5459_s8 + $0x180] sm:$0xf]  ;;  %v3727_v56 = vld [vmem:[%s5459_s8 + $0x184] sm:$0xf0] }
 0x22b   : > { %v1434_v63 = vpop.f32.mrf.mxu3  ;;  %v1150_v21 = vadd.f32 %v4615_v49, %v1131_v60  ;;  %1893 = vmatpush.bf16.msrb.mxu3 %v3231_v43  ;;  %v3223_v49 = vor.u32 %v3729_v22, %v3222_v20  ;;  %v3163_v33 = vor.u32 %v3712_v26, %v3160_v27  ;;  %v1190_v52 = vadd.f32 %v4619_v51, %v1171_v23  ;;  %v3710_v60 = vld [vmem:[%s5459_s8 + $0x104] sm:$0xf]  ;;  %v3334_v8 = vld [vmem:[%s5459_s8 + $0x70] sm:$0xf]  ;;  %v3709_v12 = vld [vmem:[%s5459_s8 + $0xf4] sm:$0xf0] }
 0x22c   : > { %vm1516_vm7 = vcmp.ge.f32.partialorder %v1508_v32, 0.0  ;;  %v1524_v2 = vmul.f32 0.01, %v1508_v32  ;;  %v1511_v5 = vadd.f32 %v4682_v24, %v1498_v44  ;;  %v1435_v36 = vadd.f32 %v1434_v63, %v1415_v18  ;;  %v3158_v18 = vld [vmem:[%s5459_s8 + $0x110] sm:$0xf]  ;;  %1912 = vmatpush.bf16.msra.mxu1 %v3171_v16 }
 0x22d   : > { %v1475_v40 = vpop.f32.mrf.mxu0  ;;  %1874 = vmatpush.bf16.msrb.mxu2 %v3167_v39  ;;  %v3159_v6 = vor.u32 %v3713_v19, %v3158_v18  ;;  %1931 = vmatpush.bf16.msra.mxu0 %v3235_v17  ;;  %v4847_v53 = vadd.f32 %v4645_v3, %v1133_v13  ;;  %v3227_v44 = vor.u32 %v3728_v34, %v3224_v42  ;;  %v3398_v39 = vld [vmem:[%s5459_s8 + $0xf0] sm:$0xf]  ;;  %v3692_v13 = vld [vmem:[%s5459_s8 + $0x74] sm:$0xf]  ;;  %v3400_v20 = vld [vmem:[%s5459_s8 + $0xf8] sm:$0xf0] }
 0x22e   : > { %v1532_v48 = vsel %vm1516_vm7, %v1508_v32, %v1524_v2  ;;  %vm1519_vm8 = vcmp.ge.f32.partialorder %v1511_v5, 0.0  ;;  %v1527_v25 = vmul.f32 0.01, %v1511_v5  ;;  %v1482_v4 = vadd.f32 %v1435_v36, %v1147_v62  ;;  %v1458_v62 = vpop.f32.mrf.mxu1  ;;  %v3152_v2 = vld [vmem:[%s5459_s8 + $0x108] sm:$0xf0] }
 0x22f   : > { %v4803_v29 = vpack.c.bf16 %v1533_v37, %v1532_v48  ;;  %v1476_v30 = vadd.f32 %v1475_v40, %v1456_v0  ;;  %1894 = vmatpush.bf16.msrb.mxu3 %v3223_v49  ;;  %v3151_v0 = vor.u32 %v3711_v35, %v3150_v41  ;;  %v3215_v1 = vor.u32 %v3727_v56, %v3214_v38  ;;  %v3216_v36 = vld [vmem:[%s5459_s8 + $0x188] sm:$0xf0]  ;;  %v3708_v19 = vld [vmem:[%s5459_s8 + $0xf4] sm:$0xf]  ;;  %v3691_v27 = vld [vmem:[%s5459_s8 + $0x64] sm:$0xf0] }
 0x230   : > { %v1497_v15 = vmul.f32 %v4715_v28, %v1482_v4  ;;  %v1535_v51 = vsel %vm1519_vm8, %v1511_v5, %v1527_v25  ;;  %v3726_v5 = vld [vmem:[%s5459_s8 + $0x184] sm:$0xf]  ;;  %1913 = vmatpush.bf16.msra.mxu1 %v3163_v33  ;;  %v3155_v10 = vor.u32 %v3710_v60, %v3152_v2  ;;  %v3399_v18 = vor.u32 %v3709_v12, %v3398_v39  ;;  %v3707_v49 = vld [vmem:[%s5459_s8 + $0xe4] sm:$0xf0]  ;;  %v3328_v35 = vld [vmem:[%s5459_s8 + $0x68] sm:$0xf0] }
 0x231   : > { %v1485_v50 = vadd.f32 %v1476_v30, %v1188_v46  ;;  %1875 = vmatpush.bf16.msrb.mxu2 %v3159_v6  ;;  %v1548_v7 = vunpack.c.l.b16 %v4803_v29  ;;  %1932 = vmatpush.bf16.msra.mxu0 %v3227_v44  ;;  %v1549_v11 = vunpack.c.h.b16 %v4803_v29  ;;  %v3219_v4 = vor.u32 %v3726_v5, %v3216_v36  ;;  %v3693_v30 = vld [vmem:[%s5459_s8 + $0x74] sm:$0xf0]  ;;  %v1420_v6 = vpop.f32.mrf.mxu2  ;;  %v3690_v41 = vld [vmem:[%s5459_s8 + $0x64] sm:$0xf]  ;;  %v3382_v5 = vld [vmem:[%s5459_s8 + $0xd0] sm:$0xf] }
 0x232   : > { %v1510_v31 = vadd.f32 %v4739_v14, %v1497_v15  ;;  %v3335_v29 = vor.u32 %v3693_v30, %v3334_v8  ;;  %v3336_v15 = vld [vmem:[%s5459_s8 + $0x78] sm:$0xf0]  ;;  %v3403_v26 = vor.u32 %v3708_v19, %v3400_v20  ;;  %v3689_v2 = vld [vmem:[%s5459_s8 + $0x54] sm:$0xf0]  ;;  %v3374_v39 = vld [vmem:[%s5459_s8 + $0xc0] sm:$0xf] }
 0x233   : > { %v1500_v55 = vmul.f32 %v4673_v54, %v1485_v50  ;;  %v1437_v32 = vpop.f32.mrf.mxu3  ;;  %1895 = vmatpush.bf16.msrb.mxu3 %v3215_v1  ;;  %v3331_v1 = vor.u32 %v3690_v41, %v3328_v35  ;;  %v3705_v36 = vld [vmem:[%s5459_s8 + $0xd4] sm:$0xf0]  ;;  %v3684_v35 = vld [vmem:[%s5459_s8 + $0x34] sm:$0xf] }
 0x234   : > { %vm1518_vm9 = vcmp.ge.f32.partialorder %v1510_v31, 0.0  ;;  %v1526_v3 = vmul.f32 0.01, %v1510_v31  ;;  %v1438_v59 = vadd.f32 %v1437_v32, %v1418_v45  ;;  %1914 = vmatpush.bf16.msra.mxu1 %v3155_v10  ;;  %v3383_v8 = vor.u32 %v3705_v36, %v3382_v5  ;;  %v3682_v36 = vld [vmem:[%s5459_s8 + $0x24] sm:$0xf] }
 0x235   : > { %v1513_v61 = vadd.f32 %v4682_v24, %v1500_v55  ;;  %v1477_v63 = vpop.f32.mrf.mxu0  ;;  %1876 = vmatpush.bf16.msrb.mxu2 %v3151_v0  ;;  %1933 = vmatpush.bf16.msra.mxu0 %v3219_v4 }
 0x236   : > { %v1534_v23 = vsel %vm1518_vm9, %v1510_v31, %v1526_v3  ;;  %v1484_v46 = vadd.f32 %v1438_v59, %v1150_v21  ;;  %v1478_v37 = vadd.f32 %v1477_v63, %v1458_v62  ;;  %v3326_v21 = vld [vmem:[%s5459_s8 + $0x60] sm:$0xf]  ;;  %v3392_v62 = vld [vmem:[%s5459_s8 + $0xe8] sm:$0xf0]  ;;  %v3318_v63 = vld [vmem:[%s5459_s8 + $0x50] sm:$0xf] }
 0x237   : > { %v1541_v40 = vpack.c.bf16 %v1535_v51, %v1534_v23  ;;  %vm1521_vm10 = vcmp.ge.f32.partialorder %v1513_v61, 0.0  ;;  %v1529_v47 = vmul.f32 0.01, %v1513_v61  ;;  %v3390_v31 = vld [vmem:[%s5459_s8 + $0xe0] sm:$0xf]  ;;  %2124 = vmatpush.bf16.msra.mxu3 %v3399_v18  ;;  %v3319_v10 = vor.u32 %v3689_v2, %v3318_v63 }
 0x238   : > { %v1499_v48 = vmul.f32 %v4715_v28, %v1484_v46  ;;  %v1487_v25 = vadd.f32 %v1478_v37, %v1190_v52  ;;  %v3706_v51 = vld [vmem:[%s5459_s8 + $0xe4] sm:$0xf]  ;;  %v3391_v0 = vor.u32 %v3707_v49, %v3390_v31  ;;  %v3320_v46 = vld [vmem:[%s5459_s8 + $0x58] sm:$0xf0]  ;;  %v3704_v37 = vld [vmem:[%s5459_s8 + $0xd4] sm:$0xf] }
 0x239   : > { %v1550_v43 = vunpack.c.l.b16 %v1541_v40  ;;  %v1551_v9 = vunpack.c.h.b16 %v1541_v40  ;;  %v1537_v57 = vsel %vm1521_vm10, %v1513_v61, %v1529_v47  ;;  %2105 = vmatpush.bf16.msra.mxu2 %v3335_v29  ;;  %2162 = vmatpush.bf16.msrb.mxu0 %v3403_v26  ;;  %v3327_v61 = vor.u32 %v3691_v27, %v3326_v21  ;;  %v3312_v18 = vld [vmem:[%s5459_s8 + $0x48] sm:$0xf0] }
 0x23a   : > { %v1512_v16 = vadd.f32 %v4739_v14, %v1499_v48  ;;  %v1502_v17 = vmul.f32 %v4673_v54, %v1487_v25  ;;  %v3339_v54 = vor.u32 %v3692_v13, %v3336_v15  ;;  %v3395_v47 = vor.u32 %v3706_v51, %v3392_v62  ;;  %v3310_v48 = vld [vmem:[%s5459_s8 + $0x40] sm:$0xf]  ;;  %v3687_v25 = vld [vmem:[%s5459_s8 + $0x44] sm:$0xf0]  ;;  %v3700_v51 = vld [vmem:[%s5459_s8 + $0xb4] sm:$0xf] }
 0x23b   : > { %v1556_v45 = vpack.c.b16 %v1550_v43, %v1548_v7  ;;  %v1557_v50 = vpack.c.b16 %v1551_v9, %v1549_v11  ;;  %v1439_v22 = vpop.f32.mrf.mxu3  ;;  %2125 = vmatpush.bf16.msra.mxu3 %v3391_v0  ;;  %v3384_v11 = vld [vmem:[%s5459_s8 + $0xd8] sm:$0xf0]  ;;  %v3703_v43 = vld [vmem:[%s5459_s8 + $0xc4] sm:$0xf0]  ;;  %v3358_v0 = vld [vmem:[%s5459_s8 + $0xa0] sm:$0xf] }
 0x23c   : > { %vm1520_vm11 = vcmp.ge.f32.partialorder %v1512_v16, 0.0  ;;  %v1528_v33 = vmul.f32 0.01, %v1512_v16  ;;  %v1515_v34 = vadd.f32 %v4682_v24, %v1502_v17  ;;  %v1440_v42 = vadd.f32 %v1439_v22, %v1420_v6  ;;  %2143 = vmatpush.bf16.msrb.mxu1 %v3339_v54  ;;  %v3686_v17 = vld [vmem:[%s5459_s8 + $0x44] sm:$0xf] }
 0x23d   : > { %v1561_v52 = vshrl.u32 %v1556_v45, 16  ;;  %v1564_v55 = vshll.u32 %v1556_v45, 16  ;;  %v1568_v32 = vshrl.u32 %v1557_v50, 16  ;;  %v1571_v44 = vshll.u32 %v1557_v50, 16  ;;  %2106 = vmatpush.bf16.msra.mxu2 %v3327_v61  ;;  %2163 = vmatpush.bf16.msrb.mxu0 %v3395_v47  ;;  %v3702_v50 = vld [vmem:[%s5459_s8 + $0xc4] sm:$0xf] }
 0x23e   : > { %v1536_v38 = vsel %vm1520_vm11, %v1512_v16, %v1528_v33  ;;  %vm1523_vm12 = vcmp.ge.f32.partialorder %v1515_v34, 0.0  ;;  %v1531_v56 = vmul.f32 0.01, %v1515_v34  ;;  %v1486_v24 = vadd.f32 %v1440_v42, %v4847_v53  ;;  %v3376_v6 = vld [vmem:[%s5459_s8 + $0xc8] sm:$0xf0] }
 0x23f   : > { %v4925_v3 = vrot.slane %v1561_v52, 7  ;;  %v4927_v59 = vrot.slane %v1568_v32, 7  ;;  %v4929_v60 = vpack.c.bf16 %v1537_v57, %v1536_v38  ;;  %v3387_v15 = vor.u32 %v3704_v37, %v3384_v11  ;;  %2126 = vmatpush.bf16.msra.mxu3 %v3383_v8  ;;  %v3302_v33 = vld [vmem:[%s5459_s8 + $0x30] sm:$0xf]  ;;  %v3304_v38 = vld [vmem:[%s5459_s8 + $0x38] sm:$0xf0] }
 0x240   : > { %v1501_v53 = vmul.f32 %v4715_v28, %v1486_v24  ;;  %v3688_v28 = vld [vmem:[%s5459_s8 + $0x54] sm:$0xf]  ;;  %2144 = vmatpush.bf16.msrb.mxu1 %v3331_v1  ;;  %v1539_v9 = vsel %vm1523_vm12, %v1515_v34, %v1531_v56  ;;  %v3311_v16 = vor.u32 %v3687_v25, %v3310_v48  ;;  %v3375_v21 = vor.u32 %v3703_v43, %v3374_v39  ;;  %v3685_v34 = vld [vmem:[%s5459_s8 + $0x34] sm:$0xf0]  ;;  %v3366_v42 = vld [vmem:[%s5459_s8 + $0xb0] sm:$0xf] }
 0x241   : > { %v1566_v7 = vor.u32 %v1564_v55, %v4925_v3  ;;  %v1573_v23 = vor.u32 %v1571_v44, %v4927_v59  ;;  %v3323_v30 = vor.u32 %v3688_v28, %v3320_v46  ;;  %2107 = vmatpush.bf16.msra.mxu2 %v3319_v10  ;;  %v3315_v45 = vor.u32 %v3686_v17, %v3312_v18  ;;  %v3701_v44 = vld [vmem:[%s5459_s8 + $0xb4] sm:$0xf0]  ;;  %v3294_v61 = vld [vmem:[%s5459_s8 + $0x20] sm:$0xf]  ;;  %v3699_v1 = vld [vmem:[%s5459_s8 + $0xa4] sm:$0xf0] }
 0x242   : > { %v1514_v40 = vadd.f32 %v4739_v14, %v1501_v53  ;;  %v1552_v31 = vunpack.c.l.b16 %v4929_v60  ;;  %2164 = vmatpush.bf16.msrb.mxu0 %v3387_v15  ;;  %v3379_v49 = vor.u32 %v3702_v50, %v3376_v6  ;;  %v1553_v41 = vunpack.c.h.b16 %v4929_v60  ;;  %v3368_v60 = vld [vmem:[%s5459_s8 + $0xb8] sm:$0xf0]  ;;  %v3683_v53 = vld [vmem:[%s5459_s8 + $0x24] sm:$0xf0]  ;;  %v3360_v47 = vld [vmem:[%s5459_s8 + $0xa8] sm:$0xf0] }
 0x243   : > { %v4970_v4 = vsel %vm3985_vm3, 0, %v1566_v7  ;;  %v4974_v14 = vsel %vm3985_vm3, 0, %v1573_v23  ;;  %v3303_v32 = vor.u32 %v3685_v34, %v3302_v33  ;;  %2127 = vmatpush.bf16.msra.mxu3 %v3375_v21  ;;  %v3367_v56 = vor.u32 %v3701_v44, %v3366_v42  ;;  %v3296_v7 = vld [vmem:[%s5459_s8 + $0x28] sm:$0xf0]  ;;  %v3698_v23 = vld [vmem:[%s5459_s8 + $0xa4] sm:$0xf] }
 0x244   : > { %vm1522_vm13 = vcmp.ge.f32.partialorder %v1514_v40, 0.0  ;;  %v1530_v57 = vmul.f32 0.01, %v1514_v40  ;;  %v1668_v29 = vshll.u32 %v4970_v4, 16  ;;  %v1666_v12 = vshrl.u32 %v4970_v4, 16  ;;  %2145 = vmatpush.bf16.msrb.mxu1 %v3323_v30 }
 0x245   : > { %v1680_v13 = vshll.u32 %v4974_v14, 16  ;;  %v1678_v20 = vshrl.u32 %v4974_v14, 16  ;;  %v2218_v27 = vrot.slane %v4970_v4, 1  ;;  %2108 = vmatpush.bf16.msra.mxu2 %v3311_v16  ;;  %v3307_v24 = vor.u32 %v3684_v35, %v3304_v38  ;;  %v3286_v48 = vld [vmem:[%s5459_s8 + $0x10] sm:$0xf] }
 0x246   : > { %v1538_v19 = vsel %vm1522_vm13, %v1514_v40, %v1530_v57  ;;  %v1670_v54 = vrot.slane %v1668_v29, 1  ;;  %2165 = vmatpush.bf16.msrb.mxu0 %v3379_v49  ;;  %v3371_v2 = vor.u32 %v3700_v51, %v3368_v60  ;;  %v3295_v5 = vor.u32 %v3683_v53, %v3294_v61  ;;  %v3681_v25 = vld [vmem:[%s5459_s8 + $0x14] sm:$0xf0]  ;;  %v3350_v8 = vld [vmem:[%s5459_s8 + $0x90] sm:$0xf] }
 0x247   : > { %v1543_v22 = vpack.c.bf16 %v1539_v9, %v1538_v19  ;;  %v1682_v26 = vrot.slane %v1680_v13, 1  ;;  %2128 = vmatpush.bf16.msra.mxu3 %v3367_v56  ;;  %v3359_v10 = vor.u32 %v3699_v1, %v3358_v0  ;;  %v3299_v11 = vor.u32 %v3682_v36, %v3296_v7  ;;  %v3697_v43 = vld [vmem:[%s5459_s8 + $0x94] sm:$0xf0]  ;;  %v3680_v9 = vld [vmem:[%s5459_s8 + $0x14] sm:$0xf] }
 0x248   : > { %2146 = vmatpush.bf16.msrb.mxu1 %v3315_v45  ;;  %v1671_v57 = vor.u32 %v1670_v54, %v1666_v12  ;;  %v3363_v13 = vor.u32 %v3698_v23, %v3360_v47  ;;  %v3287_v15 = vor.u32 %v3681_v25, %v3286_v48  ;;  %v3288_v16 = vld [vmem:[%s5459_s8 + $0x18] sm:$0xf0]  ;;  %v3696_v17 = vld [vmem:[%s5459_s8 + $0x94] sm:$0xf]  ;;  %v3278_v45 = vld [vmem:[%s5459_s8] sm:$0xf]  ;;  %v3351_v54 = vor.u32 %v3697_v43, %v3350_v8 }
 0x249   : > { %v1554_v52 = vunpack.c.l.b16 %v1543_v22  ;;  %v1555_v55 = vunpack.c.h.b16 %v1543_v22  ;;  %2109 = vmatpush.bf16.msra.mxu2 %v3303_v32  ;;  %v1683_v29 = vor.u32 %v1682_v26, %v1678_v20  ;;  %v3352_v18 = vld [vmem:[%s5459_s8 + $0x98] sm:$0xf0]  ;;  %v3679_v50 = vld [vmem:[%s5459_s8 + $0x4] sm:$0xf0]  ;;  %v3291_v26 = vor.u32 %v3680_v9, %v3288_v16  ;;  %v3344_v35 = vld [vmem:[%s5459_s8 + $0x88] sm:$0xf0] }
 0x24a   : > { %2166 = vmatpush.bf16.msrb.mxu0 %v3371_v2  ;;  %v3355_v34 = vor.u32 %v3696_v17, %v3352_v18  ;;  %v3279_v42 = vor.u32 %v3679_v50, %v3278_v45  ;;  %v2221_v53 = vrot.slane %v4974_v14, 1  ;;  %v3773_v47 = vld [vmem:[%s5459_s8 + $0x2f4] sm:$0xf0]  ;;  %v3772_v43 = vld [vmem:[%s5459_s8 + $0x2f4] sm:$0xf] }
 0x24b   : > { %v1558_v62 = vpack.c.b16 %v1554_v52, %v1552_v31  ;;  %v1559_v63 = vpack.c.b16 %v1555_v55, %v1553_v41  ;;  %2129 = vmatpush.bf16.msra.mxu3 %v3359_v10  ;;  %v3695_v31 = vld [vmem:[%s5459_s8 + $0x84] sm:$0xf0]  ;;  %v3678_v41 = vld [vmem:[%s5459_s8 + $0x4] sm:$0xf]  ;;  %v3280_v52 = vld [vmem:[%s5459_s8 + $0x8] sm:$0xf0] }
 0x24c   : > { %2147 = vmatpush.bf16.msrb.mxu1 %v3307_v24  ;;  %v3694_v55 = vld [vmem:[%s5459_s8 + $0x84] sm:$0xf]  ;;  %v3343_v44 = vor.u32 %v3695_v31, %v3342_v58  ;;  %v3283_v51 = vor.u32 %v3678_v41, %v3280_v52  ;;  %v3756_v10 = vld [vmem:[%s5459_s8 + $0x274] sm:$0xf]  ;;  %v3486_v9 = vld [vmem:[%s5459_s8 + $0x260] sm:$0xf] }
 0x24d   : > { %v1575_v28 = vshrl.u32 %v1558_v62, 16  ;;  %v1578_v46 = vshll.u32 %v1558_v62, 16  ;;  %v1583_v37 = vshrl.u32 %v1559_v63, 16  ;;  %v1586_v40 = vshll.u32 %v1559_v63, 16  ;;  %2110 = vmatpush.bf16.msra.mxu2 %v3295_v5  ;;  %v3771_v16 = vld [vmem:[%s5459_s8 + $0x2e4] sm:$0xf0] }
 0x24e   : > { %2167 = vmatpush.bf16.msrb.mxu0 %v3363_v13  ;;  %v3347_v62 = vor.u32 %v3694_v55, %v3344_v35  ;;  %v3755_v13 = vld [vmem:[%s5459_s8 + $0x264] sm:$0xf0]  ;;  %v3754_v18 = vld [vmem:[%s5459_s8 + $0x264] sm:$0xf]  ;;  %v3552_v50 = vld [vmem:[%s5459_s8 + $0x2e8] sm:$0xf0] }
 0x24f   : > { %v1577_v30 = vrot.slane %v1575_v28, 7  ;;  %v1585_v39 = vrot.slane %v1583_v37, 7  ;;  %2130 = vmatpush.bf16.msra.mxu3 %v3351_v54  ;;  %v3494_v28 = vld [vmem:[%s5459_s8 + $0x270] sm:$0xf]  ;;  %v3769_v31 = vld [vmem:[%s5459_s8 + $0x2d4] sm:$0xf0] }
 0x250   : > { %2148 = vmatpush.bf16.msrb.mxu1 %v3299_v11  ;;  %v3558_v37 = vld [vmem:[%s5459_s8 + $0x2f0] sm:$0xf]  ;;  %v3496_v11 = vld [vmem:[%s5459_s8 + $0x278] sm:$0xf0]  ;;  %v3768_v41 = vld [vmem:[%s5459_s8 + $0x2d4] sm:$0xf] }
 0x251   : > { %v1580_v19 = vor.u32 %v1578_v46, %v1577_v30  ;;  %v1588_v21 = vor.u32 %v1586_v40, %v1585_v39  ;;  %v5078_v12 = vsel %vm3985_vm3, %v1577_v30, 0  ;;  %v5082_v20 = vsel %vm3985_vm3, %v1585_v39, 0  ;;  %2111 = vmatpush.bf16.msra.mxu2 %v3287_v15  ;;  %v3757_v46 = vld [vmem:[%s5459_s8 + $0x274] sm:$0xf0]  ;;  %v3550_v15 = vld [vmem:[%s5459_s8 + $0x2e0] sm:$0xf] }
 0x252   : > { %v1693_v6 = vshll.u32 %v5078_v12, 16  ;;  %v1701_v22 = vshll.u32 %v5082_v20, 16  ;;  %v2224_v1 = vrot.slane %v5078_v12, 1  ;;  %v2226_v2 = vrot.slane %v5082_v20, 1  ;;  %2168 = vmatpush.bf16.msrb.mxu0 %v3355_v34  ;;  %v3542_v58 = vld [vmem:[%s5459_s8 + $0x2d0] sm:$0xf] }
 0x253   : > { %v5100_v49 = vsel %vm567_vm1, %v4925_v3, %v1580_v19  ;;  %v5104_v33 = vsel %vm567_vm1, %v4927_v59, %v1588_v21  ;;  %v3495_v40 = vor.u32 %v3757_v46, %v3494_v28  ;;  %v3559_v39 = vor.u32 %v3773_v47, %v3558_v37  ;;  %2131 = vmatpush.bf16.msra.mxu3 %v3343_v44  ;;  %v3488_v19 = vld [vmem:[%s5459_s8 + $0x268] sm:$0xf0]  ;;  %v3770_v21 = vld [vmem:[%s5459_s8 + $0x2e4] sm:$0xf]  ;;  %v3752_v34 = vld [vmem:[%s5459_s8 + $0x254] sm:$0xf] }
 0x254   : > { %v1673_v3 = vshll.u32 %v5100_v49, 16  ;;  %v1685_v32 = vshll.u32 %v5104_v33, 16  ;;  %v1689_v59 = vshrl.u32 %v5100_v49, 16  ;;  %v1695_v38 = vrot.slane %v1693_v6, 1  ;;  %2149 = vmatpush.bf16.msrb.mxu1 %v3291_v26  ;;  %v3478_v6 = vld [vmem:[%s5459_s8 + $0x250] sm:$0xf] }
 0x255   : > { %v1697_v56 = vshrl.u32 %v5104_v33, 16  ;;  %v1703_v24 = vrot.slane %v1701_v22, 1  ;;  %v2219_v63 = vrot.slane %v5100_v49, 1  ;;  %v2222_v0 = vrot.slane %v5104_v33, 1  ;;  %2112 = vmatpush.bf16.msra.mxu2 %v3279_v42  ;;  %v3753_v22 = vld [vmem:[%s5459_s8 + $0x254] sm:$0xf0] }
 0x256   : > { %v1675_v60 = vrot.slane %v1673_v3, 1  ;;  %v1687_v61 = vrot.slane %v1685_v32, 1  ;;  %2169 = vmatpush.bf16.msrb.mxu0 %v3347_v62  ;;  %v3487_v20 = vor.u32 %v3755_v13, %v3486_v9  ;;  %v3551_v45 = vor.u32 %v3771_v16, %v3550_v15  ;;  %v3480_v42 = vld [vmem:[%s5459_s8 + $0x258] sm:$0xf0]  ;;  %v3470_v44 = vld [vmem:[%s5459_s8 + $0x240] sm:$0xf] }
 0x257   : > { %v5150_v48 = vsel %vm1229_vm5, %v2218_v27, %v2219_v63  ;;  %v5153_v25 = vsel %vm1229_vm5, %v2221_v53, %v2222_v0  ;;  %v3560_v27 = vld [vmem:[%s5459_s8 + $0x2f8] sm:$0xf0]  ;;  %v5182_v17 = vsel %vm1229_vm5, %v2219_v63, %v2224_v1  ;;  %v5194_v12 = vsel %vm1229_vm5, %v2222_v0, %v2226_v2  ;;  %v3751_v35 = vld [vmem:[%s5459_s8 + $0x244] sm:$0xf0]  ;;  %v3462_v1 = vld [vmem:[%s5459_s8 + $0x230] sm:$0xf] }
 0x258   : > { %v1676_v5 = vsel %vm675_vm4, %v1671_v57, %v1675_v60  ;;  %v1688_v36 = vsel %vm675_vm4, %v1683_v29, %v1687_v61  ;;  %v1691_v7 = vor.u32 %v1689_v59, %v1675_v60  ;;  %v1699_v23 = vor.u32 %v1697_v56, %v1687_v61  ;;  %2150 = vmatpush.bf16.msrb.mxu1 %v3283_v51  ;;  %v3544_v52 = vld [vmem:[%s5459_s8 + $0x2d8] sm:$0xf0]  ;;  %v3767_v56 = vld [vmem:[%s5459_s8 + $0x2c4] sm:$0xf0]  ;;  %v3472_v51 = vld [vmem:[%s5459_s8 + $0x248] sm:$0xf0] }
 0x259   : > { %1877 = vmatmul.bf16.vlgmr.msrb.gmra.mxu2 %v1676_v5  ;;  %1896 = vmatmul.bf16.vlgmr.msrb.gmra.mxu3 %v1688_v36  ;;  %v3499_v57 = vor.u32 %v3756_v10, %v3496_v11  ;;  %v5170_v29 = vor.u32 %v3772_v43, %v3560_v27  ;;  %v3491_v54 = vor.u32 %v3754_v18, %v3488_v19  ;;  %v3766_v60 = vld [vmem:[%s5459_s8 + $0x2c4] sm:$0xf]  ;;  %v3536_v61 = vld [vmem:[%s5459_s8 + $0x2c8] sm:$0xf0]  ;;  %v3749_v2 = vld [vmem:[%s5459_s8 + $0x234] sm:$0xf0] }
 0x25a   : > { %1915 = vmatmul.bf16.vlgmr.msra.gmra.mxu1 %v1676_v5  ;;  %1934 = vmatmul.bf16.vlgmr.msra.gmra.mxu0 %v1688_v36  ;;  %v5156_v8 = vsel %vm675_vm4, %v1691_v7, %v1695_v38  ;;  %v5159_v30 = vsel %vm675_vm4, %v1699_v23, %v1703_v24  ;;  %v5206_v26 = vor.u32 %v3770_v21, %v3552_v50  ;;  %v3534_v38 = vld [vmem:[%s5459_s8 + $0x2c0] sm:$0xf]  ;;  %v3750_v24 = vld [vmem:[%s5459_s8 + $0x244] sm:$0xf]  ;;  %v3526_v5 = vld [vmem:[%s5459_s8 + $0x2b0] sm:$0xf] }
 0x25b   : > { %2392 = vmatpush.bf16.msrb.mxu2 %v3495_v40  ;;  %2411 = vmatpush.bf16.msrb.mxu3 %v3559_v39  ;;  %v3479_v55 = vor.u32 %v3753_v22, %v3478_v6  ;;  %v3543_v3 = vor.u32 %v3769_v31, %v3542_v58  ;;  %v3483_v32 = vor.u32 %v3752_v34, %v3480_v42  ;;  %v3765_v36 = vld [vmem:[%s5459_s8 + $0x2b4] sm:$0xf0]  ;;  %v3748_v7 = vld [vmem:[%s5459_s8 + $0x234] sm:$0xf]  ;;  %v3464_v23 = vld [vmem:[%s5459_s8 + $0x238] sm:$0xf0] }
 0x25c   : > { %2430 = vmatpush.bf16.msra.mxu1 %v3499_v57  ;;  %2449 = vmatpush.bf16.msra.mxu0 %v5170_v29  ;;  %v5227_v59 = vor.u32 %v3768_v41, %v3544_v52  ;;  %v3471_v62 = vor.u32 %v3751_v35, %v3470_v44  ;;  %v3535_v63 = vor.u32 %v3767_v56, %v3534_v38  ;;  %v3764_v28 = vld [vmem:[%s5459_s8 + $0x2b4] sm:$0xf]  ;;  %v3528_v46 = vld [vmem:[%s5459_s8 + $0x2b8] sm:$0xf0]  ;;  %v3454_v47 = vld [vmem:[%s5459_s8 + $0x220] sm:$0xf] }
 0x25d   : > { %v3475_v53 = vor.u32 %v3750_v24, %v3472_v51  ;;  %v5254_v0 = vor.u32 %v3766_v60, %v3536_v61  ;;  %v3463_v37 = vor.u32 %v3749_v2, %v3462_v1  ;;  %v3527_v40 = vor.u32 %v3765_v36, %v3526_v5  ;;  %v3747_v10 = vld [vmem:[%s5459_s8 + $0x224] sm:$0xf0]  ;;  %v3746_v43 = vld [vmem:[%s5459_s8 + $0x224] sm:$0xf]  ;;  %v3456_v27 = vld [vmem:[%s5459_s8 + $0x228] sm:$0xf0] }
 0x25e   : > { %v3467_v11 = vor.u32 %v3748_v7, %v3464_v23  ;;  %v3763_v39 = vld [vmem:[%s5459_s8 + $0x2a4] sm:$0xf0]  ;;  %v3762_v9 = vld [vmem:[%s5459_s8 + $0x2a4] sm:$0xf]  ;;  %v3520_v57 = vld [vmem:[%s5459_s8 + $0x2a8] sm:$0xf0]  ;;  %v3455_v13 = vor.u32 %v3747_v10, %v3454_v47  ;;  %v3459_v19 = vor.u32 %v3746_v43, %v3456_v27 }
 0x25f   : > { %2393 = vmatpush.bf16.msrb.mxu2 %v3487_v20  ;;  %2412 = vmatpush.bf16.msrb.mxu3 %v3551_v45  ;;  %v3446_v16 = vld [vmem:[%s5459_s8 + $0x210] sm:$0xf]  ;;  %v3745_v18 = vld [vmem:[%s5459_s8 + $0x214] sm:$0xf0]  ;;  %v3523_v21 = vor.u32 %v3762_v9, %v3520_v57  ;;  %v3744_v50 = vld [vmem:[%s5459_s8 + $0x214] sm:$0xf] }
 0x260   : > { %2431 = vmatpush.bf16.msra.mxu1 %v3491_v54  ;;  %2450 = vmatpush.bf16.msra.mxu0 %v5206_v26  ;;  %v3510_v20 = vld [vmem:[%s5459_s8 + $0x290] sm:$0xf]  ;;  %v3761_v45 = vld [vmem:[%s5459_s8 + $0x294] sm:$0xf0]  ;;  %v3448_v6 = vld [vmem:[%s5459_s8 + $0x218] sm:$0xf0]  ;;  %v3447_v58 = vor.u32 %v3745_v18, %v3446_v16 }
 0x261   : > { %v3760_v22 = vld [vmem:[%s5459_s8 + $0x294] sm:$0xf]  ;;  %v3512_v54 = vld [vmem:[%s5459_s8 + $0x298] sm:$0xf0]  ;;  %v3511_v31 = vor.u32 %v3761_v45, %v3510_v20  ;;  %v3438_v34 = vld [vmem:[%s5459_s8 + $0x200] sm:$0xf]  ;;  %v3451_v41 = vor.u32 %v3744_v50, %v3448_v6 }
 0x262   : > { %v3743_v42 = vld [vmem:[%s5459_s8 + $0x204] sm:$0xf0]  ;;  %v3515_v52 = vor.u32 %v3760_v22, %v3512_v54  ;;  %v3440_v44 = vld [vmem:[%s5459_s8 + $0x208] sm:$0xf0]  ;;  %v3758_v35 = vld [vmem:[%s5459_s8 + $0x284] sm:$0xf] }
 0x263   : > { %2394 = vmatpush.bf16.msrb.mxu2 %v3479_v55  ;;  %2413 = vmatpush.bf16.msrb.mxu3 %v3543_v3  ;;  %v3502_v55 = vld [vmem:[%s5459_s8 + $0x280] sm:$0xf]  ;;  %v3759_v3 = vld [vmem:[%s5459_s8 + $0x284] sm:$0xf0]  ;;  %v3504_v38 = vld [vmem:[%s5459_s8 + $0x288] sm:$0xf0]  ;;  %v3439_v56 = vor.u32 %v3743_v42, %v3438_v34 }
 0x264   : > { %2432 = vmatpush.bf16.msra.mxu1 %v3483_v32  ;;  %2451 = vmatpush.bf16.msra.mxu0 %v5227_v59  ;;  %v3742_v32 = vld [vmem:[%s5459_s8 + $0x204] sm:$0xf]  ;;  %v3503_v24 = vor.u32 %v3759_v3, %v3502_v55  ;;  %v3507_v60 = vor.u32 %v3758_v35, %v3504_v38 }
 0x265   : > { %v3443_v51 = vor.u32 %v3742_v32, %v3440_v44 }
 0x267   : > { %2395 = vmatpush.bf16.msrb.mxu2 %v3471_v62  ;;  %2414 = vmatpush.bf16.msrb.mxu3 %v3535_v63 }
 0x268   : > { %2433 = vmatpush.bf16.msra.mxu1 %v3475_v53  ;;  %2452 = vmatpush.bf16.msra.mxu0 %v5254_v0 }
 0x269   : > { %1882 = vmatmul.bf16.gmra.mxu2 %v5156_v8  ;;  %1901 = vmatmul.bf16.gmra.mxu3 %v5159_v30 }
 0x26a   : > { %1920 = vmatmul.bf16.gmra.mxu1 %v5156_v8  ;;  %1939 = vmatmul.bf16.gmra.mxu0 %v5159_v30  ;;  %v3531_v8 = vor.u32 %v3764_v28, %v3528_v46  ;;  %v3518_v30 = vld [vmem:[%s5459_s8 + $0x2a0] sm:$0xf] }
 0x26b   : > { %2396 = vmatpush.bf16.msrb.mxu2 %v3463_v37  ;;  %2415 = vmatpush.bf16.msrb.mxu3 %v3527_v40  ;;  %v3519_v15 = vor.u32 %v3763_v39, %v3518_v30 }
 0x26c   : > { %2434 = vmatpush.bf16.msra.mxu1 %v3467_v11  ;;  %2453 = vmatpush.bf16.msra.mxu0 %v3531_v8 }
 0x26f   : > { %2397 = vmatpush.bf16.msrb.mxu2 %v3455_v13  ;;  %2416 = vmatpush.bf16.msrb.mxu3 %v3519_v15  ;;  %v2476_v13 = vld [vmem:[%s5460_s9] sm:$0x3] }
 0x270   : > { %2435 = vmatpush.bf16.msra.mxu1 %v3459_v19  ;;  %2454 = vmatpush.bf16.msra.mxu0 %v3523_v21  ;;  %v2477_v19 = vld [vmem:[%s5461_s10] sm:$0x3]  ;;  %v5409_v45 = vperm.slane %v2476_v13, 1  ;;  %v2479_v55 = vperm.slane %v2476_v13, 0 }
 0x271   : > { %v5411_v54 = vperm.slane %v2477_v19, 1  ;;  %v2492_v35 = vperm.slane %v2477_v19, 0 }
 0x273   : > { %2398 = vmatpush.bf16.msrb.mxu2 %v3447_v58  ;;  %2417 = vmatpush.bf16.msrb.mxu3 %v3511_v31 }
 0x274   : > { %2436 = vmatpush.bf16.msra.mxu1 %v3451_v41  ;;  %2455 = vmatpush.bf16.msra.mxu0 %v3515_v52 }
 0x277   : > { %2399 = vmatpush.bf16.msrb.mxu2 %v3439_v56  ;;  %2418 = vmatpush.bf16.msrb.mxu3 %v3503_v24 }
 0x278   : > { %2437 = vmatpush.bf16.msra.mxu1 %v3443_v51  ;;  %2456 = vmatpush.bf16.msra.mxu0 %v3507_v60 }
 0x279   : > { %2113 = vmatmul.bf16.vlgmr.msra.gmra.mxu2 %v4970_v4  ;;  %2132 = vmatmul.bf16.vlgmr.msra.gmra.mxu3 %v4974_v14 }
 0x27a   : > { %2151 = vmatmul.bf16.vlgmr.msrb.gmra.mxu1 %v4970_v4  ;;  %2170 = vmatmul.bf16.vlgmr.msrb.gmra.mxu0 %v4974_v14 }
 0x27b   : > { %3774 = vmatpush.bf16.msra.mxu2 %v5170_v29 }
 0x27f   : > { %3775 = vmatpush.bf16.msra.mxu2 %v5206_v26 }
 0x283   : > { %3776 = vmatpush.bf16.msra.mxu2 %v5227_v59 }
 0x287   : > { %3777 = vmatpush.bf16.msra.mxu2 %v5254_v0 }
 0x289   : > { %2118 = vmatmul.bf16.gmra.mxu2 %v5100_v49  ;;  %2137 = vmatmul.bf16.gmra.mxu3 %v5104_v33 }
 0x28a   : > { %2156 = vmatmul.bf16.gmra.mxu1 %v5100_v49  ;;  %2175 = vmatmul.bf16.gmra.mxu0 %v5104_v33 }
 0x28b   : > { %3778 = vmatpush.bf16.msra.mxu2 %v3531_v8 }
 0x28f   : > { %3779 = vmatpush.bf16.msra.mxu2 %v3523_v21 }
 0x293   : > { %3780 = vmatpush.bf16.msra.mxu2 %v3515_v52 }
 0x297   : > { %3781 = vmatpush.bf16.msra.mxu2 %v3507_v60 }
 0x299   : > { %2400 = vmatmul.bf16.vlgmr.msrb.gmra.mxu2 %v5150_v48  ;;  %2419 = vmatmul.bf16.vlgmr.msrb.gmra.mxu3 %v5153_v25 }
 0x29a   : > { %2438 = vmatmul.bf16.vlgmr.msra.gmra.mxu1 %v5150_v48  ;;  %2457 = vmatmul.bf16.vlgmr.msra.gmra.mxu0 %v5153_v25 }
 0x2a9   : > { %2405 = vmatmul.bf16.gmra.mxu2 %v5182_v17  ;;  %2424 = vmatmul.bf16.gmra.mxu3 %v5194_v12 }
 0x2aa   : > { %2443 = vmatmul.bf16.gmra.mxu1 %v5182_v17 }
 0x2b9   : > { %2462 = vmatmul.bf16.vlgmr.msra.gmra.mxu2 %v5194_v12 }
 0x2d7   : > { %v1916_v4 = vpop.f32.mrf.mxu1  ;;  %v1935_v14 = vpop.f32.mrf.mxu0 }
 0x2d8   : > { %v1936_v43 = vadd.f32 %v1935_v14, %v1916_v4 }
 0x2dc   : > { %v1878_v49 = vpop.f32.mrf.mxu2  ;;  %v1897_v33 = vpop.f32.mrf.mxu3 }
 0x2dd   : > { %v1898_v15 = vadd.f32 %v1897_v33, %v1878_v49 }
 0x2df   : > { %v1918_v29 = vpop.f32.mrf.mxu1  ;;  %v1937_v26 = vpop.f32.mrf.mxu0 }
 0x2e0   : > { %v1938_v6 = vadd.f32 %v1937_v26, %v1918_v29 }
 0x2e4   : > { %v1880_v59 = vpop.f32.mrf.mxu2  ;;  %v1899_v61 = vpop.f32.mrf.mxu3 }
 0x2e5   : > { %v1900_v32 = vadd.f32 %v1899_v61, %v1880_v59 }
 0x2e7   : > { %v1921_v48 = vpop.f32.mrf.mxu1  ;;  %v1940_v62 = vpop.f32.mrf.mxu0 }
 0x2e8   : > { %v5377_v25 = vadd.f32 %v1940_v62, %v1921_v48 }
 0x2ec   : > { %v5379_v63 = vpop.f32.mrf.mxu2  ;;  %v5381_v53 = vpop.f32.mrf.mxu3 }
 0x2ef   : > { %v1923_v0 = vpop.f32.mrf.mxu1  ;;  %v1942_v17 = vpop.f32.mrf.mxu0 }
 0x2f0   : > { %v5383_v1 = vadd.f32 %v1942_v17, %v1923_v0 }
 0x2f4   : > { %v5385_v12 = vpop.f32.mrf.mxu2  ;;  %v5387_v2 = vpop.f32.mrf.mxu3 }
 0x2f7   : > { %v2152_v5 = vpop.f32.mrf.mxu1  ;;  %v2171_v36 = vpop.f32.mrf.mxu0 }
 0x2f8   : > { %v2153_v27 = vadd.f32 %v2152_v5, %v1936_v43  ;;  %v1903_v5 = vadd.f32 %v5381_v53, %v5379_v63  ;;  %v1905_v63 = vadd.f32 %v5387_v2, %v5385_v12 }
 0x2fa   : > { %v2172_v21 = vadd.f32 %v2171_v36, %v2153_v27 }
 0x2fc   : > { %v2114_v7 = vpop.f32.mrf.mxu2  ;;  %v2133_v23 = vpop.f32.mrf.mxu3 }
 0x2fd   : > { %v2115_v50 = vadd.f32 %v2114_v7, %v1898_v15 }
 0x2ff   : > { %v2154_v28 = vpop.f32.mrf.mxu1  ;;  %v2173_v46 = vpop.f32.mrf.mxu0  ;;  %v2134_v41 = vadd.f32 %v2133_v23, %v2115_v50 }
 0x300   : > { %v2155_v58 = vadd.f32 %v2154_v28, %v1938_v6 }
 0x302   : > { %v2174_v24 = vadd.f32 %v2173_v46, %v2155_v58 }
 0x304   : > { %v2116_v37 = vpop.f32.mrf.mxu2  ;;  %v2135_v40 = vpop.f32.mrf.mxu3 }
 0x305   : > { %v2117_v4 = vadd.f32 %v2116_v37, %v1900_v32 }
 0x307   : > { %v5389_v47 = vpop.f32.mrf.mxu1  ;;  %v5391_v10 = vpop.f32.mrf.mxu0  ;;  %v2136_v48 = vadd.f32 %v2135_v40, %v2117_v4 }
 0x308   : > { %v2158_v12 = vadd.f32 %v5389_v47, %v5377_v25 }
 0x30c   : > { %v2119_v11 = vpop.f32.mrf.mxu2  ;;  %v5393_v8 = vpop.f32.mrf.mxu3 }
 0x30d   : > { %v2120_v28 = vadd.f32 %v2119_v11, %v1903_v5 }
 0x30f   : > { %v5395_v30 = vpop.f32.mrf.mxu1  ;;  %v5397_v39 = vpop.f32.mrf.mxu0  ;;  %v2139_v13 = vadd.f32 %v5393_v8, %v2120_v28 }
 0x314   : > { %v5399_v9 = vpop.f32.mrf.mxu2  ;;  %v5401_v57 = vpop.f32.mrf.mxu3 }
 0x315   : > { %v2122_v11 = vadd.f32 %v5399_v9, %v1905_v63 }
 0x317   : > { %v2439_v16 = vpop.f32.mrf.mxu1  ;;  %v2458_v18 = vpop.f32.mrf.mxu0  ;;  %v2141_v6 = vadd.f32 %v5401_v57, %v2122_v11 }
 0x318   : > { %v2459_v20 = vadd.f32 %v2458_v18, %v2439_v16 }
 0x31a   : > { %v2469_v22 = vadd.f32 %v2459_v20, %v2172_v21 }
 0x31c   : > { %v2484_v31 = vmul.f32 %v5409_v45, %v2469_v22  ;;  %v2401_v34 = vpop.f32.mrf.mxu2  ;;  %v2420_v42 = vpop.f32.mrf.mxu3 }
 0x31d   : > { %v2421_v52 = vadd.f32 %v2420_v42, %v2401_v34 }
 0x31e   : > { %v2497_v3 = vadd.f32 %v5411_v54, %v2484_v31 }
 0x31f   : > { %v2468_v44 = vadd.f32 %v2421_v52, %v2134_v41  ;;  %v2441_v38 = vpop.f32.mrf.mxu1  ;;  %v2460_v56 = vpop.f32.mrf.mxu0  ;;  %v2177_v41 = vadd.f32 %v5391_v10, %v2158_v12 }
 0x320   : > { %vm2505_vm14 = vcmp.ge.f32.partialorder %v2497_v3, 0.0  ;;  %v2513_v51 = vmul.f32 0.01, %v2497_v3  ;;  %v2461_v60 = vadd.f32 %v2460_v56, %v2441_v38 }
 0x321   : > { %v2483_v14 = vmul.f32 %v2479_v55, %v2468_v44  ;;  %v2160_v44 = vadd.f32 %v5395_v30, %v5383_v1 }
 0x322   : > { %v2521_v49 = vsel %vm2505_vm14, %v2497_v3, %v2513_v51  ;;  %v2471_v33 = vadd.f32 %v2461_v60, %v2174_v24 }
 0x323   : > { %2529 = vst [vmem:[%s5419_s29 + $0x8] sm:$0xff] %v2521_v49  ;;  %v2496_v29 = vadd.f32 %v2492_v35, %v2483_v14 }
 0x324   : > { %v2486_v26 = vmul.f32 %v5409_v45, %v2471_v33  ;;  %v2403_v59 = vpop.f32.mrf.mxu2  ;;  %v2422_v61 = vpop.f32.mrf.mxu3 }
 0x325   : > { %vm2504_vm15 = vcmp.ge.f32.partialorder %v2496_v29, 0.0  ;;  %v2512_v62 = vmul.f32 0.01, %v2496_v29  ;;  %v2423_v0 = vadd.f32 %v2422_v61, %v2403_v59 }
 0x326   : > { %v2499_v17 = vadd.f32 %v5411_v54, %v2486_v26 }
 0x327   : > { %v2520_v36 = vsel %vm2504_vm15, %v2496_v29, %v2512_v62  ;;  %v2470_v7 = vadd.f32 %v2423_v0, %v2136_v48  ;;  %v2444_v34 = vpop.f32.mrf.mxu1 }
 0x328   : > { %2528 = vst [vmem:[%s5419_s29] sm:$0xff] %v2520_v36  ;;  %vm2507_vm0 = vcmp.ge.f32.partialorder %v2499_v17, 0.0  ;;  %v2515_v23 = vmul.f32 0.01, %v2499_v17 }
 0x329   : > { %v2485_v46 = vmul.f32 %v2479_v55, %v2470_v7 }
 0x32a   : > { %v2523_v37 = vsel %vm2507_vm0, %v2499_v17, %v2515_v23 }
 0x32b   : > { %2531 = vst [vmem:[%s5419_s29 + $0x18] sm:$0xff] %v2523_v37  ;;  %v2498_v43 = vadd.f32 %v2492_v35, %v2485_v46 }
 0x32c   : > { %v2406_v40 = vpop.f32.mrf.mxu2  ;;  %v2425_v27 = vpop.f32.mrf.mxu3 }
 0x32d   : > { %vm2506_vm1 = vcmp.ge.f32.partialorder %v2498_v43, 0.0  ;;  %v2514_v15 = vmul.f32 0.01, %v2498_v43  ;;  %v2426_v16 = vadd.f32 %v2425_v27, %v2406_v40 }
 0x32f   : > { %v2522_v53 = vsel %vm2506_vm1, %v2498_v43, %v2514_v15  ;;  %v2472_v18 = vadd.f32 %v2426_v16, %v2139_v13  ;;  %v2446_v47 = vpop.f32.mrf.mxu1 }
 0x330   : > { %2530 = vst [vmem:[%s5419_s29 + $0x10] sm:$0xff] %v2522_v53 }
 0x331   : > { %v2487_v19 = vmul.f32 %v2479_v55, %v2472_v18 }
 0x333   : > { %v2500_v21 = vadd.f32 %v2492_v35, %v2487_v19 }
 0x334   : > { %v2408_v20 = vpop.f32.mrf.mxu2  ;;  %v2427_v50 = vpop.f32.mrf.mxu3 }
 0x335   : > { %vm2508_vm2 = vcmp.ge.f32.partialorder %v2500_v21, 0.0  ;;  %v2516_v8 = vmul.f32 0.01, %v2500_v21  ;;  %v2428_v22 = vadd.f32 %v2427_v50, %v2408_v20 }
 0x337   : > { %v2524_v58 = vsel %vm2508_vm2, %v2500_v21, %v2516_v8  ;;  %v2474_v31 = vadd.f32 %v2428_v22, %v2141_v6 }
 0x338   : > { %2532 = vst [vmem:[%s5419_s29 + $0x20] sm:$0xff] %v2524_v58 }
 0x339   : > { %v2489_v2 = vmul.f32 %v2479_v55, %v2474_v31 }
 0x33b   : > { %v2502_v42 = vadd.f32 %v2492_v35, %v2489_v2  ;;  %v2179_v35 = vadd.f32 %v5397_v39, %v2160_v44 }
 0x33c   : > { %v2463_v9 = vpop.f32.mrf.mxu2 }
 0x33d   : > { %vm2510_vm3 = vcmp.ge.f32.partialorder %v2502_v42, 0.0  ;;  %v2518_v52 = vmul.f32 0.01, %v2502_v42  ;;  %v2464_v57 = vadd.f32 %v2463_v9, %v2444_v34 }
 0x33f   : > { %v2526_v3 = vsel %vm2510_vm3, %v2502_v42, %v2518_v52  ;;  %v2473_v32 = vadd.f32 %v2464_v57, %v2177_v41 }
 0x340   : > { %2534 = vst [vmem:[%s5419_s29 + $0x30] sm:$0xff] %v2526_v3 }
 0x341   : > { %v2488_v38 = vmul.f32 %v5409_v45, %v2473_v32 }
 0x343   : > { %v2501_v25 = vadd.f32 %v5411_v54, %v2488_v38 }
 0x344   : > { %v2465_v55 = vpop.f32.mrf.mxu2 }
 0x345   : > { %vm2509_vm4 = vcmp.ge.f32.partialorder %v2501_v25, 0.0  ;;  %v2517_v10 = vmul.f32 0.01, %v2501_v25  ;;  %v2466_v56 = vadd.f32 %v2465_v55, %v2446_v47 }
 0x347   : > { %v2525_v24 = vsel %vm2509_vm4, %v2501_v25, %v2517_v10  ;;  %v2475_v51 = vadd.f32 %v2466_v56, %v2179_v35 }
 0x348   : > { %2533 = vst [vmem:[%s5419_s29 + $0x28] sm:$0xff] %v2525_v24 }
 0x349   : > { %v2490_v60 = vmul.f32 %v5409_v45, %v2475_v51 }
 0x34b   : > { %v2503_v4 = vadd.f32 %v5411_v54, %v2490_v60 }
 0x34d   : > { %vm2511_vm5 = vcmp.ge.f32.partialorder %v2503_v4, 0.0  ;;  %v2519_v1 = vmul.f32 0.01, %v2503_v4 }
 0x34f   : > { %v2527_v30 = vsel %vm2511_vm5, %v2503_v4, %v2519_v1 }
 0x350   : > { %2535 = vst [vmem:[%s5419_s29 + $0x38] sm:$0xff] %v2527_v30 }
 0x351 PF: > { %s21_s17 = sadd.s32 1, %s3797_s17  }
 0x352   : > { %p18_p4 = scmp.ge.s32.totalorder %s21_s17, 4  }
 0x354   :  { %20 = sbr.rel (!%p18_p4) target bundleno = 1 (0x1), region = 101 }

</bundles_post_ra>
